<compile_context>
chip_gen: v7x
topology: tpu7x:2x2x1
jax: 0.10.0
libtpu: 0.0.40
codegen_flags: <defaults>
</compile_context>

<pallas_src>
import functools

import jax
import jax.numpy as jnp
from jax import lax
from jax.experimental import pallas as pl
from jax.experimental.pallas import tpu as pltpu

LANE = 128  # TPU lane width: output / intermediate channels padded to this


def _round_up(x, m):
    return (x + m - 1) // m * m


def _pick_row_block(h_out, w_out, target=8):
    """Largest divisor of h_out <= target whose flat (rb*w_out) store is
    sublane-aligned; falls back to the full image (block == full dim)."""
    for rb in range(min(target, h_out), 0, -1):
        if h_out % rb == 0 and (rb * w_out) % 8 == 0:
            return rb
    return h_out


def _vmem_limit_bytes():
    """~75% of physical VMEM, capped at 100 MiB (v5e/v6e: 128 MiB physical,
    v7x: 64 MiB -> ~48 MiB limit)."""
    try:
        cap = int(getattr(pltpu.get_tpu_info(), "vmem_capacity_bytes",
                          128 << 20))
    except Exception:
        cap = 64 << 20
    return min(cap * 3 // 4, 100 << 20)


def _basic_block_kernel(x_ref, w1_ref, s1_ref, b1_ref,
                        w2_ref, s2_ref, b2_ref,
                        ws_ref, ss_ref, bs_ref,
                        out_ref, *, stride, identity_shortcut,
                        row_block, h_out, w_out):
    """One grid step = one image x one output row block.  Each 3x3 conv is
    three accumulating (M, 3*C) x (3*C, Cout) bf16 matmuls with f32
    accumulation; BN folded to scale/bias; ReLU on VPU."""
    s = stride
    rb = row_block
    rh = rb + 2                              # h rows needed (conv2 halo)
    rin = rb + 4 if s == 1 else rb + 3       # padded input rows needed
    cin = x_ref.shape[-1] // (s * s)         # per-phase input channels
    cmid_p = w1_ref.shape[-1]
    cout_p = out_ref.shape[-1]
    m1 = rh * w_out
    m2 = rb * w_out

    r0 = pl.program_id(1) * rb               # first output row of this block

    # Row window of the resident padded image (cheap in-VMEM dynamic slice).
    xsub = x_ref[:, pl.ds(r0, rin), :, :]            # f32 (1, rin, Wk, Ck)
    xsub_bf = xsub.astype(jnp.bfloat16)              # im2col built in bf16

    def tap1(dy, dx):
        if s == 1:
            return xsub_bf[:, dy:dy + rh, dx:dx + w_out, :]
        p = (dy % s) * s + (dx % s)                  # space-to-depth phase
        oy, ox = dy // s, dx // s
        return xsub_bf[:, oy:oy + rh, ox:ox + w_out, p * cin:(p + 1) * cin]

    # ---- conv1 (3x3, stride s): 3 accumulating matmuls, grouped by tap row --
    acc1 = jnp.zeros((m1, cmid_p), jnp.float32)
    for dy in range(3):
        pat = jnp.concatenate([tap1(dy, dx) for dx in range(3)],
                              axis=-1).reshape(m1, 3 * cin)
        acc1 = acc1 + jnp.dot(pat, w1_ref[dy * 3 * cin:(dy + 1) * 3 * cin, :],
                              preferred_element_type=jnp.float32)

    # BN1 + ReLU (f32); zero the halo rows that represent conv2's spatial zero
    # padding; drop to bf16 before building conv2's im2col.
    h = jnp.maximum(acc1 * s1_ref[...] + b1_ref[...], 0.0)
    h = h.reshape(rh, w_out, cmid_p)
    top = jnp.where(r0 > 0, h[0:1], 0.0)              # h row r0-1
    bot = jnp.where(r0 + rb < h_out, h[rh - 1:rh], 0.0)  # h row r0+rb
    h = jnp.concatenate([top, h[1:rh - 1], bot], axis=0).astype(jnp.bfloat16)
    zc = jnp.zeros((rh, 1, cmid_p), jnp.bfloat16)
    hp = jnp.concatenate([zc, h, zc], axis=1)         # W zero pad (bf16)

    # ---- conv2 (3x3, stride 1): 3 accumulating matmuls ----------------------
    acc2 = jnp.zeros((m2, cout_p), jnp.float32)
    for dy in range(3):
        pat = jnp.concatenate([hp[dy:dy + rb, dx:dx + w_out, :]
                               for dx in range(3)],
                              axis=-1).reshape(m2, 3 * cmid_p)
        acc2 = acc2 + jnp.dot(
            pat, w2_ref[dy * 3 * cmid_p:(dy + 1) * 3 * cmid_p, :],
            preferred_element_type=jnp.float32)
    res = acc2 * s2_ref[...] + b2_ref[...]            # BN2 (f32)

    # ---- shortcut ------------------------------------------------------------
    if s == 1:
        xs = xsub[:, 2:2 + rb, 1:1 + w_out, :]
    else:
        xs = xsub[:, 1:1 + rb, 0:w_out, 3 * cin:4 * cin]  # stride-2 samples
    xs = xs.reshape(m2, cin)
    if identity_shortcut:
        short = xs                                    # exact f32 identity
        if cout_p > cin:
            short = jnp.concatenate(
                [short, jnp.zeros((m2, cout_p - cin), jnp.float32)], axis=-1)
    else:
        short = (jnp.dot(xs.astype(jnp.bfloat16), ws_ref[...],
                         preferred_element_type=jnp.float32)
                 * ss_ref[...] + bs_ref[...])

    out = jnp.maximum(res + short, 0.0)
    # Flat (rows*cols, channels) store: lane- and sublane-dense vst.
    out_ref[...] = out.reshape(1, m2, cout_p).astype(out_ref.dtype)


def basic_block_pallas(x_nchw, kparams, *, cout, identity, stride=1,
                       row_block=8):
    """x_nchw: (N, Cin, H, W) f32; kparams from prepare_params().
    Returns (N, Cout, Hout, Wout) f32."""
    assert stride in (1, 2)
    (w1, s1, b1, w2, s2, b2, ws, ss, bs) = kparams
    N, cin, H, W = x_nchw.shape
    s = stride
    h_out = (H + 2 - 3) // s + 1
    w_out = (W + 2 - 3) // s + 1
    cout_p = s2.shape[-1]
    if identity:
        assert s == 1 and cin == cout

    # TODO(synk): keep NHWC end-to-end (drop these transposes) when the caller
    # can consume/produce NHWC directly.
    x_nhwc = jnp.transpose(x_nchw, (0, 2, 3, 1))
    if s == 1:
        # 2-row / 1-col zero border so every output row block (including the
        # conv2 halo rows it recomputes) reads a valid contiguous window.
        xin = jnp.pad(x_nhwc, ((0, 0), (2, 2), (1, 1), (0, 0)))
        cin_in = cin
    else:
        # Space-to-depth phase split: every in-kernel access is a contiguous
        # slice (no strided sublane gathers on v5e/v6e).
        # TODO(synk): fuse this pad+gather+concat into a single wrapper pass.
        xp = jnp.pad(x_nhwc, ((0, 0), (1, 1), (1, 1), (0, 0)))
        hq, wq = h_out + 1, w_out + 1
        phases = []
        for r in range(s):
            for c in range(s):
                ph = xp[:, r::s, c::s, :][:, :hq, :wq, :]
                ph = jnp.pad(ph, ((0, 0), (0, hq - ph.shape[1]),
                                  (0, wq - ph.shape[2]), (0, 0)))
                phases.append(ph)
        xin = jnp.concatenate(phases, axis=-1)
        xin = jnp.pad(xin, ((0, 0), (1, 1), (0, 0), (0, 0)))  # +1 row halo
        cin_in = s * s * cin

    rb = _pick_row_block(h_out, w_out, target=row_block)
    grid = (N, h_out // rb)
    hk, wk = xin.shape[1], xin.shape[2]

    kern = functools.partial(_basic_block_kernel, stride=s,
                             identity_shortcut=identity,
                             row_block=rb, h_out=h_out, w_out=w_out)

    def _full2(shape):                         # whole-array (2-D) operand
        return pl.BlockSpec(shape, lambda n, j: (0, 0))

    out = pl.pallas_call(
        kern,
        out_shape=jax.ShapeDtypeStruct((N, h_out * w_out, cout_p),
                                       jnp.float32),
        grid_spec=pltpu.PrefetchScalarGridSpec(
            num_scalar_prefetch=0,
            grid=grid,
            in_specs=[
                # Whole padded image resident per batch step; its block index
                # doesn't change across row blocks, so it is DMA'd once/image.
                pl.BlockSpec((1, hk, wk, cin_in), lambda n, j: (n, 0, 0, 0)),
                _full2(w1.shape), _full2(s1.shape), _full2(b1.shape),
                _full2(w2.shape), _full2(s2.shape), _full2(b2.shape),
                _full2(ws.shape), _full2(ss.shape), _full2(bs.shape),
            ],
            out_specs=pl.BlockSpec((1, rb * w_out, cout_p),
                                   lambda n, j: (n, j, 0)),
        ),
        compiler_params=pltpu.CompilerParams(
            dimension_semantics=("parallel", "parallel"),
            vmem_limit_bytes=_vmem_limit_bytes()),
    )(xin, w1, s1, b1, w2, s2, b2, ws, ss, bs)

    out = out[..., :cout].reshape(N, h_out, w_out, cout)
    return jnp.transpose(out, (0, 3, 1, 2))            # NHWC -> NCHW


def prepare_params(torch_params):
    """Torch-layout (OIHW weights, folded-BN vectors) -> kernel layout:
    im2col-flattened bf16 weights, channels zero-padded to the lane width."""
    (w1, s1, b1, w2, s2, b2, ws, ss, bs) = torch_params
    cmid, cin = w1.shape[0], w1.shape[1]
    cout = w2.shape[0]
    cmid_p = _round_up(cmid, LANE)
    cout_p = _round_up(cout, LANE)

    def pad_last(a, n):
        return jnp.pad(a, [(0, 0)] * (a.ndim - 1) + [(0, n - a.shape[-1])])

    w1k = jnp.transpose(w1, (2, 3, 1, 0)).reshape(9 * cin, cmid)
    w1k = pad_last(w1k, cmid_p).astype(jnp.bfloat16)
    s1k = pad_last(s1.reshape(1, cmid).astype(jnp.float32), cmid_p)
    b1k = pad_last(b1.reshape(1, cmid).astype(jnp.float32), cmid_p)

    w2k = jnp.transpose(w2, (2, 3, 1, 0))                  # (3,3,cmid,cout)
    w2k = jnp.pad(w2k, ((0, 0), (0, 0), (0, cmid_p - cmid), (0, cout_p - cout)))
    w2k = w2k.reshape(9 * cmid_p, cout_p).astype(jnp.bfloat16)
    s2k = pad_last(s2.reshape(1, cout).astype(jnp.float32), cout_p)
    b2k = pad_last(b2.reshape(1, cout).astype(jnp.float32), cout_p)

    if ws is None:                                          # identity shortcut
        wsk = jnp.zeros((cin, cout_p), jnp.bfloat16)
        ssk = jnp.zeros((1, cout_p), jnp.float32)
        bsk = jnp.zeros((1, cout_p), jnp.float32)
        identity = True
    else:
        wsk = pad_last(jnp.transpose(ws, (2, 3, 1, 0)).reshape(cin, cout),
                       cout_p).astype(jnp.bfloat16)
        ssk = pad_last(ss.reshape(1, cout).astype(jnp.float32), cout_p)
        bsk = pad_last(bs.reshape(1, cout).astype(jnp.float32), cout_p)
        identity = False

    arrays = (w1k, s1k, b1k, w2k, s2k, b2k, wsk, ssk, bsk)
    return arrays, cout, identity


def make_params(key, cin, cout, *, identity_shortcut, eps=1e-5):
    """Deterministic synthetic torch-layout parameters (BN folded)."""
    ks = jax.random.split(key, 6)

    def bn_fold(k, C):
        kg, kb, km, kv = jax.random.split(k, 4)
        gamma = 1.0 + 0.1 * jax.random.normal(kg, (C,), jnp.float32)
        beta = 0.1 * jax.random.normal(kb, (C,), jnp.float32)
        mean = 0.1 * jax.random.normal(km, (C,), jnp.float32)
        var = jnp.abs(jax.random.normal(kv, (C,), jnp.float32)) + 0.5
        scale = gamma / jnp.sqrt(var + eps)
        return scale, beta - mean * scale

    w1 = 0.2 * jax.random.normal(ks[0], (cout, cin, 3, 3), jnp.float32)
    s1, b1 = bn_fold(ks[1], cout)
    w2 = 0.2 * jax.random.normal(ks[2], (cout, cout, 3, 3), jnp.float32)
    s2, b2 = bn_fold(ks[3], cout)
    if identity_shortcut:
        ws, ss, bs = None, None, None
    else:
        ws = 0.2 * jax.random.normal(ks[4], (cout, cin, 1, 1), jnp.float32)
        ss, bs = bn_fold(ks[5], cout)
    return (w1, s1, b1, w2, s2, b2, ws, ss, bs)


def basic_block_ref(x, torch_params, *, stride=1):
    """Pure-JAX NCHW reference (eval-mode BN, dropout = identity)."""
    (w1, s1, b1, w2, s2, b2, ws, ss, bs) = torch_params
    dn = ('NCHW', 'OIHW', 'NCHW')
    cvec = lambda v: v.reshape(1, -1, 1, 1)
    y = lax.conv_general_dilated(x, w1, (stride, stride), ((1, 1), (1, 1)),
                                 dimension_numbers=dn)
    y = jnp.maximum(y * cvec(s1) + cvec(b1), 0.0)
    y = lax.conv_general_dilated(y, w2, (1, 1), ((1, 1), (1, 1)),
                                 dimension_numbers=dn)
    y = y * cvec(s2) + cvec(b2)
    if ws is None:
        sc = x
    else:
        sc = lax.conv_general_dilated(x, ws, (stride, stride),
                                      ((0, 0), (0, 0)), dimension_numbers=dn)
        sc = sc * cvec(ss) + cvec(bs)
    return jnp.maximum(y + sc, 0.0)


def _run_case(name, key, *, n, cin, cout, hw, stride, row_block=8):
    kx, kp = jax.random.split(key)
    x = jax.random.normal(kx, (n, cin, hw, hw), jnp.float32)
    identity = (stride == 1 and cin == cout)
    tp = make_params(kp, cin, cout, identity_shortcut=identity)
    kparams, cout_m, ident_m = prepare_params(tp)

    fwd = jax.jit(functools.partial(basic_block_pallas, cout=cout_m,
                                    identity=ident_m, stride=stride,
                                    row_block=row_block))
    out = jax.block_until_ready(fwd(x, kparams))
    ref = jax.block_until_ready(basic_block_ref(x, tp, stride=stride))

    assert out.shape == ref.shape, (name, out.shape, ref.shape)
    err = float(jnp.max(jnp.abs(out - ref)))
    scale = float(jnp.max(jnp.abs(ref))) + 1e-6
    # bf16 matmul inputs with f32 accumulation -> ~1% normalized error budget.
    assert err <= 5e-2 * scale, (name, err, scale)


if __name__ == "__main__":
    key = jax.random.PRNGKey(0)
    k1, k2, k3 = jax.random.split(key, 3)
    # Main config: conv1x1+BN shortcut (cin != cout), stride 1, 2 row blocks.
    _run_case("s1_conv_shortcut", k1, n=2, cin=4, cout=8, hw=16, stride=1)
    # Downsampling block: stride 2 (space-to-depth path), conv shortcut.
    _run_case("s2_downsample", k2, n=2, cin=4, cout=8, hw=16, stride=2)
    # Identity shortcut (stride 1, cin == cout), batch 4 x 2 row blocks.
    _run_case("s1_identity", k3, n=4, cin=8, cout=8, hw=16, stride=1)
    print("KERNEL_OK")
</pallas_src>

<mosaic_0001>
module attributes {stable_mosaic.version = 11 : i64} {
  func.func @_basic_block_kernel(%arg0: i32, %arg1: i32, %arg2: memref<1x20x18x4xf32, #tpu.memory_space<vmem>>, %arg3: memref<36x128xbf16, #tpu.memory_space<vmem>>, %arg4: memref<1x128xf32, #tpu.memory_space<vmem>>, %arg5: memref<1x128xf32, #tpu.memory_space<vmem>>, %arg6: memref<1152x128xbf16, #tpu.memory_space<vmem>>, %arg7: memref<1x128xf32, #tpu.memory_space<vmem>>, %arg8: memref<1x128xf32, #tpu.memory_space<vmem>>, %arg9: memref<4x128xbf16, #tpu.memory_space<vmem>>, %arg10: memref<1x128xf32, #tpu.memory_space<vmem>>, %arg11: memref<1x128xf32, #tpu.memory_space<vmem>>, %arg12: memref<1x128x128xf32, #tpu.memory_space<vmem>>) attributes {dimension_semantics = [#tpu.dimension_semantics<parallel>, #tpu.dimension_semantics<parallel>], iteration_bounds = array<i64: 2, 2>, scalar_prefetch = 0 : i64, scratch_operands = 0 : i64, tpu.core_type = #tpu.core_type<tc>, window_params = [{transform_indices = @transform_0, window_bounds = array<i64: 1, 20, 18, 4>}, {pipeline_mode = #tpu.pipeline_mode<synchronous>, transform_indices = @transform_1, window_bounds = array<i64: 36, 128>}, {pipeline_mode = #tpu.pipeline_mode<synchronous>, transform_indices = @transform_2, window_bounds = array<i64: 1, 128>}, {pipeline_mode = #tpu.pipeline_mode<synchronous>, transform_indices = @transform_3, window_bounds = array<i64: 1, 128>}, {pipeline_mode = #tpu.pipeline_mode<synchronous>, transform_indices = @transform_4, window_bounds = array<i64: 1152, 128>}, {pipeline_mode = #tpu.pipeline_mode<synchronous>, transform_indices = @transform_5, window_bounds = array<i64: 1, 128>}, {pipeline_mode = #tpu.pipeline_mode<synchronous>, transform_indices = @transform_6, window_bounds = array<i64: 1, 128>}, {pipeline_mode = #tpu.pipeline_mode<synchronous>, transform_indices = @transform_7, window_bounds = array<i64: 4, 128>}, {pipeline_mode = #tpu.pipeline_mode<synchronous>, transform_indices = @transform_8, window_bounds = array<i64: 1, 128>}, {pipeline_mode = #tpu.pipeline_mode<synchronous>, transform_indices = @transform_9, window_bounds = array<i64: 1, 128>}, {transform_indices = @transform_10, window_bounds = array<i64: 1, 128, 128>}]} {
    %c8_i32 = arith.constant 8 : i32
    %0 = arith.muli %arg1, %c8_i32 : i32
    %c0 = arith.constant 0 : index
    %1 = arith.index_cast %0 : i32 to index
    %c0_0 = arith.constant 0 : index
    %c0_1 = arith.constant 0 : index
    %2 = vector.load %arg2[%c0, %1, %c0_0, %c0_1] : memref<1x20x18x4xf32, #tpu.memory_space<vmem>>, vector<1x12x18x4xf32>
    %3 = arith.truncf %2 : vector<1x12x18x4xf32> to vector<1x12x18x4xbf16>
    %cst = arith.constant 0.000000e+00 : f32
    %4 = vector.broadcast %cst : f32 to vector<160x128xf32>
    %5 = vector.extract_strided_slice %3 {offsets = [0, 0, 0, 0], sizes = [1, 10, 16, 4], strides = [1, 1, 1, 1]} : vector<1x12x18x4xbf16> to vector<1x10x16x4xbf16>
    %6 = vector.extract_strided_slice %3 {offsets = [0, 0, 1, 0], sizes = [1, 10, 16, 4], strides = [1, 1, 1, 1]} : vector<1x12x18x4xbf16> to vector<1x10x16x4xbf16>
    %7 = vector.extract_strided_slice %3 {offsets = [0, 0, 2, 0], sizes = [1, 10, 16, 4], strides = [1, 1, 1, 1]} : vector<1x12x18x4xbf16> to vector<1x10x16x4xbf16>
    %8 = tpu.concatenate %5, %6, %7 in 3 : vector<1x10x16x4xbf16>, vector<1x10x16x4xbf16>, vector<1x10x16x4xbf16> -> vector<1x10x16x12xbf16>
    %9 = vector.shape_cast %8 : vector<1x10x16x12xbf16> to vector<160x12xbf16>
    %c0_2 = arith.constant 0 : index
    %c0_3 = arith.constant 0 : index
    %10 = vector.load %arg3[%c0_2, %c0_3] : memref<36x128xbf16, #tpu.memory_space<vmem>>, vector<12x128xbf16>
    %cst_4 = arith.constant dense<0.000000e+00> : vector<160x128xf32>
    %11 = tpu.matmul %9, %10, %cst_4 {dimension_numbers = #tpu.dot_dimension_numbers<[1], [0], [0], [1], [0, 0, 1, 1], [], []>} : vector<160x12xbf16>, vector<12x128xbf16>, vector<160x128xf32> -> vector<160x128xf32>
    %12 = arith.addf %4, %11 : vector<160x128xf32>
    %13 = vector.extract_strided_slice %3 {offsets = [0, 1, 0, 0], sizes = [1, 10, 16, 4], strides = [1, 1, 1, 1]} : vector<1x12x18x4xbf16> to vector<1x10x16x4xbf16>
    %14 = vector.extract_strided_slice %3 {offsets = [0, 1, 1, 0], sizes = [1, 10, 16, 4], strides = [1, 1, 1, 1]} : vector<1x12x18x4xbf16> to vector<1x10x16x4xbf16>
    %15 = vector.extract_strided_slice %3 {offsets = [0, 1, 2, 0], sizes = [1, 10, 16, 4], strides = [1, 1, 1, 1]} : vector<1x12x18x4xbf16> to vector<1x10x16x4xbf16>
    %16 = tpu.concatenate %13, %14, %15 in 3 : vector<1x10x16x4xbf16>, vector<1x10x16x4xbf16>, vector<1x10x16x4xbf16> -> vector<1x10x16x12xbf16>
    %17 = vector.shape_cast %16 : vector<1x10x16x12xbf16> to vector<160x12xbf16>
    %c12 = arith.constant 12 : index
    %c0_5 = arith.constant 0 : index
    %18 = vector.load %arg3[%c12, %c0_5] : memref<36x128xbf16, #tpu.memory_space<vmem>>, vector<12x128xbf16>
    %cst_6 = arith.constant dense<0.000000e+00> : vector<160x128xf32>
    %19 = tpu.matmul %17, %18, %cst_6 {dimension_numbers = #tpu.dot_dimension_numbers<[1], [0], [0], [1], [0, 0, 1, 1], [], []>} : vector<160x12xbf16>, vector<12x128xbf16>, vector<160x128xf32> -> vector<160x128xf32>
    %20 = arith.addf %12, %19 : vector<160x128xf32>
    %21 = vector.extract_strided_slice %3 {offsets = [0, 2, 0, 0], sizes = [1, 10, 16, 4], strides = [1, 1, 1, 1]} : vector<1x12x18x4xbf16> to vector<1x10x16x4xbf16>
    %22 = vector.extract_strided_slice %3 {offsets = [0, 2, 1, 0], sizes = [1, 10, 16, 4], strides = [1, 1, 1, 1]} : vector<1x12x18x4xbf16> to vector<1x10x16x4xbf16>
    %23 = vector.extract_strided_slice %3 {offsets = [0, 2, 2, 0], sizes = [1, 10, 16, 4], strides = [1, 1, 1, 1]} : vector<1x12x18x4xbf16> to vector<1x10x16x4xbf16>
    %24 = tpu.concatenate %21, %22, %23 in 3 : vector<1x10x16x4xbf16>, vector<1x10x16x4xbf16>, vector<1x10x16x4xbf16> -> vector<1x10x16x12xbf16>
    %25 = vector.shape_cast %24 : vector<1x10x16x12xbf16> to vector<160x12xbf16>
    %c24 = arith.constant 24 : index
    %c0_7 = arith.constant 0 : index
    %26 = vector.load %arg3[%c24, %c0_7] : memref<36x128xbf16, #tpu.memory_space<vmem>>, vector<12x128xbf16>
    %cst_8 = arith.constant dense<0.000000e+00> : vector<160x128xf32>
    %27 = tpu.matmul %25, %26, %cst_8 {dimension_numbers = #tpu.dot_dimension_numbers<[1], [0], [0], [1], [0, 0, 1, 1], [], []>} : vector<160x12xbf16>, vector<12x128xbf16>, vector<160x128xf32> -> vector<160x128xf32>
    %28 = arith.addf %20, %27 : vector<160x128xf32>
    %c0_9 = arith.constant 0 : index
    %c0_10 = arith.constant 0 : index
    %29 = vector.load %arg4[%c0_9, %c0_10] : memref<1x128xf32, #tpu.memory_space<vmem>>, vector<1x128xf32>
    %30 = vector.broadcast %29 : vector<1x128xf32> to vector<160x128xf32>
    %31 = arith.mulf %28, %30 : vector<160x128xf32>
    %c0_11 = arith.constant 0 : index
    %c0_12 = arith.constant 0 : index
    %32 = vector.load %arg5[%c0_11, %c0_12] : memref<1x128xf32, #tpu.memory_space<vmem>>, vector<1x128xf32>
    %33 = vector.broadcast %32 : vector<1x128xf32> to vector<160x128xf32>
    %34 = arith.addf %31, %33 : vector<160x128xf32>
    %cst_13 = arith.constant 0.000000e+00 : f32
    %35 = vector.broadcast %cst_13 : f32 to vector<160x128xf32>
    %36 = arith.maximumf %34, %35 : vector<160x128xf32>
    %37 = vector.shape_cast %36 : vector<160x128xf32> to vector<10x16x128xf32>
    %c0_i32 = arith.constant 0 : i32
    %38 = arith.cmpi sgt, %0, %c0_i32 : i32
    %39 = vector.extract_strided_slice %37 {offsets = [0, 0, 0], sizes = [1, 16, 128], strides = [1, 1, 1]} : vector<10x16x128xf32> to vector<1x16x128xf32>
    %cst_14 = arith.constant 0.000000e+00 : f32
    %40 = vector.broadcast %cst_14 : f32 to vector<1x16x128xf32>
    %41 = arith.select %38, %39, %40 : vector<1x16x128xf32>
    %c8_i32_15 = arith.constant 8 : i32
    %42 = arith.addi %0, %c8_i32_15 : i32
    %c16_i32 = arith.constant 16 : i32
    %43 = arith.cmpi slt, %42, %c16_i32 : i32
    %44 = vector.extract_strided_slice %37 {offsets = [9, 0, 0], sizes = [1, 16, 128], strides = [1, 1, 1]} : vector<10x16x128xf32> to vector<1x16x128xf32>
    %cst_16 = arith.constant 0.000000e+00 : f32
    %45 = vector.broadcast %cst_16 : f32 to vector<1x16x128xf32>
    %46 = arith.select %43, %44, %45 : vector<1x16x128xf32>
    %47 = vector.extract_strided_slice %37 {offsets = [1, 0, 0], sizes = [8, 16, 128], strides = [1, 1, 1]} : vector<10x16x128xf32> to vector<8x16x128xf32>
    %48 = tpu.concatenate %41, %47, %46 in 0 : vector<1x16x128xf32>, vector<8x16x128xf32>, vector<1x16x128xf32> -> vector<10x16x128xf32>
    %49 = arith.truncf %48 : vector<10x16x128xf32> to vector<10x16x128xbf16>
    %cst_17 = arith.constant 0.000000e+00 : bf16
    %50 = vector.broadcast %cst_17 : bf16 to vector<10x1x128xbf16>
    %51 = tpu.concatenate %50, %49, %50 in 1 : vector<10x1x128xbf16>, vector<10x16x128xbf16>, vector<10x1x128xbf16> -> vector<10x18x128xbf16>
    %cst_18 = arith.constant 0.000000e+00 : f32
    %52 = vector.broadcast %cst_18 : f32 to vector<128x128xf32>
    %53 = vector.extract_strided_slice %51 {offsets = [0, 0, 0], sizes = [8, 16, 128], strides = [1, 1, 1]} : vector<10x18x128xbf16> to vector<8x16x128xbf16>
    %54 = vector.extract_strided_slice %51 {offsets = [0, 1, 0], sizes = [8, 16, 128], strides = [1, 1, 1]} : vector<10x18x128xbf16> to vector<8x16x128xbf16>
    %55 = vector.extract_strided_slice %51 {offsets = [0, 2, 0], sizes = [8, 16, 128], strides = [1, 1, 1]} : vector<10x18x128xbf16> to vector<8x16x128xbf16>
    %56 = tpu.concatenate %53, %54, %55 in 2 : vector<8x16x128xbf16>, vector<8x16x128xbf16>, vector<8x16x128xbf16> -> vector<8x16x384xbf16>
    %57 = vector.shape_cast %56 : vector<8x16x384xbf16> to vector<128x384xbf16>
    %c0_19 = arith.constant 0 : index
    %c0_20 = arith.constant 0 : index
    %58 = vector.load %arg6[%c0_19, %c0_20] : memref<1152x128xbf16, #tpu.memory_space<vmem>>, vector<384x128xbf16>
    %cst_21 = arith.constant dense<0.000000e+00> : vector<128x128xf32>
    %59 = tpu.matmul %57, %58, %cst_21 {dimension_numbers = #tpu.dot_dimension_numbers<[1], [0], [0], [1], [0, 0, 1, 1], [], []>} : vector<128x384xbf16>, vector<384x128xbf16>, vector<128x128xf32> -> vector<128x128xf32>
    %60 = arith.addf %52, %59 : vector<128x128xf32>
    %61 = vector.extract_strided_slice %51 {offsets = [1, 0, 0], sizes = [8, 16, 128], strides = [1, 1, 1]} : vector<10x18x128xbf16> to vector<8x16x128xbf16>
    %62 = vector.extract_strided_slice %51 {offsets = [1, 1, 0], sizes = [8, 16, 128], strides = [1, 1, 1]} : vector<10x18x128xbf16> to vector<8x16x128xbf16>
    %63 = vector.extract_strided_slice %51 {offsets = [1, 2, 0], sizes = [8, 16, 128], strides = [1, 1, 1]} : vector<10x18x128xbf16> to vector<8x16x128xbf16>
    %64 = tpu.concatenate %61, %62, %63 in 2 : vector<8x16x128xbf16>, vector<8x16x128xbf16>, vector<8x16x128xbf16> -> vector<8x16x384xbf16>
    %65 = vector.shape_cast %64 : vector<8x16x384xbf16> to vector<128x384xbf16>
    %c384 = arith.constant 384 : index
    %c0_22 = arith.constant 0 : index
    %66 = vector.load %arg6[%c384, %c0_22] : memref<1152x128xbf16, #tpu.memory_space<vmem>>, vector<384x128xbf16>
    %cst_23 = arith.constant dense<0.000000e+00> : vector<128x128xf32>
    %67 = tpu.matmul %65, %66, %cst_23 {dimension_numbers = #tpu.dot_dimension_numbers<[1], [0], [0], [1], [0, 0, 1, 1], [], []>} : vector<128x384xbf16>, vector<384x128xbf16>, vector<128x128xf32> -> vector<128x128xf32>
    %68 = arith.addf %60, %67 : vector<128x128xf32>
    %69 = vector.extract_strided_slice %51 {offsets = [2, 0, 0], sizes = [8, 16, 128], strides = [1, 1, 1]} : vector<10x18x128xbf16> to vector<8x16x128xbf16>
    %70 = vector.extract_strided_slice %51 {offsets = [2, 1, 0], sizes = [8, 16, 128], strides = [1, 1, 1]} : vector<10x18x128xbf16> to vector<8x16x128xbf16>
    %71 = vector.extract_strided_slice %51 {offsets = [2, 2, 0], sizes = [8, 16, 128], strides = [1, 1, 1]} : vector<10x18x128xbf16> to vector<8x16x128xbf16>
    %72 = tpu.concatenate %69, %70, %71 in 2 : vector<8x16x128xbf16>, vector<8x16x128xbf16>, vector<8x16x128xbf16> -> vector<8x16x384xbf16>
    %73 = vector.shape_cast %72 : vector<8x16x384xbf16> to vector<128x384xbf16>
    %c768 = arith.constant 768 : index
    %c0_24 = arith.constant 0 : index
    %74 = vector.load %arg6[%c768, %c0_24] : memref<1152x128xbf16, #tpu.memory_space<vmem>>, vector<384x128xbf16>
    %cst_25 = arith.constant dense<0.000000e+00> : vector<128x128xf32>
    %75 = tpu.matmul %73, %74, %cst_25 {dimension_numbers = #tpu.dot_dimension_numbers<[1], [0], [0], [1], [0, 0, 1, 1], [], []>} : vector<128x384xbf16>, vector<384x128xbf16>, vector<128x128xf32> -> vector<128x128xf32>
    %76 = arith.addf %68, %75 : vector<128x128xf32>
    %c0_26 = arith.constant 0 : index
    %c0_27 = arith.constant 0 : index
    %77 = vector.load %arg7[%c0_26, %c0_27] : memref<1x128xf32, #tpu.memory_space<vmem>>, vector<1x128xf32>
    %78 = vector.broadcast %77 : vector<1x128xf32> to vector<128x128xf32>
    %79 = arith.mulf %76, %78 : vector<128x128xf32>
    %c0_28 = arith.constant 0 : index
    %c0_29 = arith.constant 0 : index
    %80 = vector.load %arg8[%c0_28, %c0_29] : memref<1x128xf32, #tpu.memory_space<vmem>>, vector<1x128xf32>
    %81 = vector.broadcast %80 : vector<1x128xf32> to vector<128x128xf32>
    %82 = arith.addf %79, %81 : vector<128x128xf32>
    %83 = vector.extract_strided_slice %2 {offsets = [0, 2, 1, 0], sizes = [1, 8, 16, 4], strides = [1, 1, 1, 1]} : vector<1x12x18x4xf32> to vector<1x8x16x4xf32>
    %84 = vector.shape_cast %83 : vector<1x8x16x4xf32> to vector<128x4xf32>
    %85 = arith.truncf %84 : vector<128x4xf32> to vector<128x4xbf16>
    %c0_30 = arith.constant 0 : index
    %c0_31 = arith.constant 0 : index
    %86 = vector.load %arg9[%c0_30, %c0_31] : memref<4x128xbf16, #tpu.memory_space<vmem>>, vector<4x128xbf16>
    %cst_32 = arith.constant dense<0.000000e+00> : vector<128x128xf32>
    %87 = tpu.matmul %85, %86, %cst_32 {dimension_numbers = #tpu.dot_dimension_numbers<[1], [0], [0], [1], [0, 0, 1, 1], [], []>} : vector<128x4xbf16>, vector<4x128xbf16>, vector<128x128xf32> -> vector<128x128xf32>
    %c0_33 = arith.constant 0 : index
    %c0_34 = arith.constant 0 : index
    %88 = vector.load %arg10[%c0_33, %c0_34] : memref<1x128xf32, #tpu.memory_space<vmem>>, vector<1x128xf32>
    %89 = vector.broadcast %88 : vector<1x128xf32> to vector<128x128xf32>
    %90 = arith.mulf %87, %89 : vector<128x128xf32>
    %c0_35 = arith.constant 0 : index
    %c0_36 = arith.constant 0 : index
    %91 = vector.load %arg11[%c0_35, %c0_36] : memref<1x128xf32, #tpu.memory_space<vmem>>, vector<1x128xf32>
    %92 = vector.broadcast %91 : vector<1x128xf32> to vector<128x128xf32>
    %93 = arith.addf %90, %92 : vector<128x128xf32>
    %94 = arith.addf %82, %93 : vector<128x128xf32>
    %cst_37 = arith.constant 0.000000e+00 : f32
    %95 = vector.broadcast %cst_37 : f32 to vector<128x128xf32>
    %96 = arith.maximumf %94, %95 : vector<128x128xf32>
    %97 = vector.shape_cast %96 : vector<128x128xf32> to vector<1x128x128xf32>
    %c0_38 = arith.constant 0 : index
    %c0_39 = arith.constant 0 : index
    %c0_40 = arith.constant 0 : index
    %98 = vector.load %arg12[%c0_38, %c0_39, %c0_40] : memref<1x128x128xf32, #tpu.memory_space<vmem>>, vector<1x128x128xf32>
    tpu.vector_store %arg12[%c0_38, %c0_39, %c0_40], %97 {strides = array<i32>} : memref<1x128x128xf32, #tpu.memory_space<vmem>>, vector<1x128x128xf32>,
    return
  }
  func.func @transform_0(%arg0: i32, %arg1: i32) -> (i32, i32, i32, i32) {
    %c0_i32 = arith.constant 0 : i32
    %c0_i32_0 = arith.constant 0 : i32
    %c0_i32_1 = arith.constant 0 : i32
    %c0_i32_2 = arith.constant 0 : i32
    return %arg0, %c0_i32, %c0_i32_0, %c0_i32_1 : i32, i32, i32, i32
  }
  func.func @transform_1(%arg0: i32, %arg1: i32) -> (i32, i32) {
    %c0_i32 = arith.constant 0 : i32
    %c0_i32_0 = arith.constant 0 : i32
    %c0_i32_1 = arith.constant 0 : i32
    return %c0_i32, %c0_i32_0 : i32, i32
  }
  func.func @transform_2(%arg0: i32, %arg1: i32) -> (i32, i32) {
    %c0_i32 = arith.constant 0 : i32
    %c0_i32_0 = arith.constant 0 : i32
    %c0_i32_1 = arith.constant 0 : i32
    return %c0_i32, %c0_i32_0 : i32, i32
  }
  func.func @transform_3(%arg0: i32, %arg1: i32) -> (i32, i32) {
    %c0_i32 = arith.constant 0 : i32
    %c0_i32_0 = arith.constant 0 : i32
    %c0_i32_1 = arith.constant 0 : i32
    return %c0_i32, %c0_i32_0 : i32, i32
  }
  func.func @transform_4(%arg0: i32, %arg1: i32) -> (i32, i32) {
    %c0_i32 = arith.constant 0 : i32
    %c0_i32_0 = arith.constant 0 : i32
    %c0_i32_1 = arith.constant 0 : i32
    return %c0_i32, %c0_i32_0 : i32, i32
  }
  func.func @transform_5(%arg0: i32, %arg1: i32) -> (i32, i32) {
    %c0_i32 = arith.constant 0 : i32
    %c0_i32_0 = arith.constant 0 : i32
    %c0_i32_1 = arith.constant 0 : i32
    return %c0_i32, %c0_i32_0 : i32, i32
  }
  func.func @transform_6(%arg0: i32, %arg1: i32) -> (i32, i32) {
    %c0_i32 = arith.constant 0 : i32
    %c0_i32_0 = arith.constant 0 : i32
    %c0_i32_1 = arith.constant 0 : i32
    return %c0_i32, %c0_i32_0 : i32, i32
  }
  func.func @transform_7(%arg0: i32, %arg1: i32) -> (i32, i32) {
    %c0_i32 = arith.constant 0 : i32
    %c0_i32_0 = arith.constant 0 : i32
    %c0_i32_1 = arith.constant 0 : i32
    return %c0_i32, %c0_i32_0 : i32, i32
  }
  func.func @transform_8(%arg0: i32, %arg1: i32) -> (i32, i32) {
    %c0_i32 = arith.constant 0 : i32
    %c0_i32_0 = arith.constant 0 : i32
    %c0_i32_1 = arith.constant 0 : i32
    return %c0_i32, %c0_i32_0 : i32, i32
  }
  func.func @transform_9(%arg0: i32, %arg1: i32) -> (i32, i32) {
    %c0_i32 = arith.constant 0 : i32
    %c0_i32_0 = arith.constant 0 : i32
    %c0_i32_1 = arith.constant 0 : i32
    return %c0_i32, %c0_i32_0 : i32, i32
  }
  func.func @transform_10(%arg0: i32, %arg1: i32) -> (i32, i32, i32) {
    %c0_i32 = arith.constant 0 : i32
    %c0_i32_0 = arith.constant 0 : i32
    return %arg0, %arg1, %c0_i32 : i32, i32, i32
  }
}

</mosaic_0001>

<bundles_post_ra>
// kernel: basic_block_pallas.1
= control target key start
LH: loop header
LB: loop body
LE: loop exit
PB: predicated region body
PF: predicated region fallthrough
CT: control target
= control target key end

     0   :  { %s4152_s13 = smov 0   ;;  %s4154_s14 = smov 0   ;;  %s5401_s0 = inlined_call_operand.vmem [shape: f32[2,20,18,4], index: 0, kind: input, shape index: {}]   ;;  %s5402_s1 = inlined_call_operand.vmem [shape: bf16[36,128], index: 1, kind: input, shape index: {}]   ;;  %s5403_s2 = inlined_call_operand.vmem [shape: f32[1,128], index: 2, kind: input, shape index: {}]   ;;  %s5404_s3 = inlined_call_operand.vmem [shape: f32[1,128], index: 3, kind: input, shape index: {}]   ;;  %s5405_s4 = inlined_call_operand.vmem [shape: bf16[1152,128], index: 4, kind: input, shape index: {}]   ;;  %s5406_s5 = inlined_call_operand.vmem [shape: f32[1,128], index: 5, kind: input, shape index: {}]   ;;  %s5407_s6 = inlined_call_operand.vmem [shape: f32[1,128], index: 6, kind: input, shape index: {}]   ;;  %s5408_s7 = inlined_call_operand.vmem [shape: bf16[4,128], index: 7, kind: input, shape index: {}]   ;;  %s5409_s8 = inlined_call_operand.vmem [shape: f32[1,128], index: 8, kind: input, shape index: {}]   ;;  %s5410_s9 = inlined_call_operand.vmem [shape: f32[1,128], index: 9, kind: input, shape index: {}]   ;;  %s5411_s10 = inlined_call_operand.vmem [shape: f32[2,256,128], index: 10, kind: output, shape index: {}]  }
   0x1   :  { %s4156_s15 = smov 0   ;;  %s4158_s16 = smov 0  }
   0x2   :  { %s4160_s17 = smov 0  }
   0x3 LB: > { %s29_s18 = sadd.s32 1, %s4085_s15  ;;  %s32_s19 = sadd.s32 1, %s4089_s16  ;;  %s4093_s17 = sphi %s4160_s17, %s20_s17   ;;  %s4089_s16 = sphi %s4158_s16, %s5419_s16   ;;  %s4085_s15 = sphi %s4156_s15, %s5418_s15   ;;  %s4081_s14 = sphi %s4154_s14, %s5417_s14   ;;  %s4077_s13 = sphi %s4152_s13, %s5416_s13  }
   0x4   : > { %p30_p0 = scmp.ge.s32.totalorder %s29_s18, 2  ;;  %p3186_p1 = scmp.ge.s32.totalorder %s4093_s17, 1 }
   0x5   : > { %p326_p2 = scmp.lt.s32.totalorder %s4093_s17, 5 }
   0x6   : > { %s5421_s18 = smov (%p30_p0, %s29_s18), 0  ;;  %s5423_s19 = smov (!%p30_p0, %s32_s19), %s4089_s16 }
   0x7   : > { %p327_p3 = pnand %p3186_p1, %p326_p2  ;;  %p34_p4 = scmp.ge.s32.totalorder %s5423_s19, 2 }
   0x8   : > { %p368_p5 = scmp.lt.s32.totalorder (!%p327_p3), %s4081_s14, 1  ;;  %s3192_s20 = smul.u32 (!%p327_p3), 192, %s4077_s13  ;;  %v3959_v0 = vld [vmem:[%s5402_s1 + $0x4] sm:$0xfc] (!%p327_p3)   ;;  %vm757_vm0 = vcmask (!%p327_p3), 1045504   ;;  %vm608_vm1 = vcmask (!%p327_p3), 1046528  }
   0x9   : > { %s5425_s19 = smov (%p34_p4, %s5423_s19), 0  ;;  %330 = sbr.rel (%p327_p3) target bundleno = 902 (0x386), region = 60 }
   0xa   : > { %v735_v1 = vrot.slane (!%p327_p3), %v3959_v0, 2  ;;  %s4095_s28 = smov (!%p327_p3), 8   ;;  %vm447_vm2 = vsmask.f32 (!%p327_p3), 7424  ;;  %s4096_s29 = smov (!%p327_p3), 4   ;;  %vm659_vm3 = vcmask (!%p327_p3), 31744  }
   0xb   : > { %vm680_vm4 = vcmask (!%p327_p3), 64512   ;;  %vm736_vm5 = vcmask (!%p327_p3), 97280   ;;  %s3191_s30 = sshll.u32 (!%p327_p3), %s4077_s13, 3  ;;  %vm1354_vm7 = vcmask (!%p327_p3), 1040384   ;;  %vm1355_vm8 = vsmask.f32 (!%p327_p3), 256 }
   0xc   : > { %3912 = vmatprep.subr.msk.bf16.mxu0 (!%p327_p3), %vm757_vm0, %v735_v1  ;;  %v759_v2 = vsel (!%p327_p3), %vm757_vm0, %v735_v1, 0  ;;  %p1241_p6 = scmp.gt.s32.totalorder (!%p327_p3), %s3191_s30, 0  ;;  %vm4565_vm9 = vmand (!%p327_p3), %vm1354_vm7, %vm1355_vm8  ;;  %vm2901_vm11 = vcmask (!%p327_p3), 1041408  }
   0xd   : > { %3597 = vmatpush3.bf16.msra.mxu0 (!%p327_p3), %v759_v2 }
  0x10   : > { %s5427_s14 = smov (!%p368_p5, %s4081_s14), 1 }
  0x11   : > { %s3916_s23 = smul.u32 480, %s5427_s14 }
  0x12   : > { %s1242_s22 = scalar_select %p1241_p6, 1, 0 }
  0x13   : > { %s372_s26 = scalar_lea.vmem %s5401_s0, %s3916_s23  ;;  %s4583_s23 = sadd.s32 8, %s3191_s30 }
  0x14   : > { %s4194_s27 = scalar_lea.vmem %s372_s26, %s3192_s20  ;;  %p1248_p7 = scmp.lt.s32.totalorder %s4583_s23, 16 }
  0x15   : > { %v390_v3 = vld [vmem:[%s4194_s27 + $0x18] sm:$0xff]  ;;  %v391_v4 = vld [vmem:[%s4194_s27 + $0x20] sm:$0xff]  ;;  %v392_v5 = vld [vmem:[%s4194_s27 + $0x28] sm:$0x3]  ;;  %s3188_s30 = sshll.u32 %s4077_s13, 4  ;;  %s3189_s13 = sshll.u32 %s5427_s14, 5 }
  0x16   : > { %v4201_v6 = vpack.c.bf16 %v391_v4, %v390_v3  ;;  %v426_v7 = vpack.c.bf16 %v392_v5, %v392_v5  ;;  %v393_v8 = vld [vmem:[%s4194_s27 + $0x30] sm:$0xff]  ;;  %v394_v9 = vld [vmem:[%s4194_s27 + $0x38] sm:$0xff]  ;;  %v395_v10 = vld [vmem:[%s4194_s27 + $0x40] sm:$0x3]  ;;  %s4611_s24 = scalar_select %p1248_p7, 1, 0 }
  0x17   : > { %v4206_v11 = vpack.c.bf16 %v394_v9, %v393_v8  ;;  %v428_v12 = vpack.c.bf16 %v395_v10, %v395_v10  ;;  %v399_v13 = vld [vmem:[%s4194_s27 + $0x60] sm:$0xff]  ;;  %v400_v14 = vld [vmem:[%s4194_s27 + $0x68] sm:$0xff]  ;;  %v401_v19 = vld [vmem:[%s4194_s27 + $0x70] sm:$0x3]  ;;  %p376_p8 = scmp.lt.s32.totalorder %s3188_s30, 31 }
  0x18   : > { %v612_v15 = vrot.slane %v4201_v6, 1  ;;  %v613_v16 = vrot.slane %v426_v7, 1  ;;  %v461_v17 = vshrl.u32 %v4201_v6, 16  ;;  %v463_v18 = vshll.u32 %v4201_v6, 16  ;;  %v396_v28 = vld [vmem:[%s4194_s27 + $0x48] sm:$0xff]  ;;  %v397_v29 = vld [vmem:[%s4194_s27 + $0x50] sm:$0xff] }
  0x19   : > { %v468_v20 = vshll.u32 %v426_v7, 16  ;;  %v615_v21 = vrot.slane %v4206_v11, 1  ;;  %v616_v22 = vrot.slane %v428_v12, 1  ;;  %v473_v23 = vshrl.u32 %v4206_v11, 16  ;;  %v398_v33 = vld [vmem:[%s4194_s27 + $0x58] sm:$0x3] }
  0x1a   : > { %v614_v24 = vsel %vm608_vm1, %v612_v15, %v613_v16  ;;  %v465_v25 = vrot.slane %v463_v18, 1  ;;  %v475_v26 = vshll.u32 %v4206_v11, 16  ;;  %v480_v27 = vshll.u32 %v428_v12, 16  ;;  %v405_v54 = vld [vmem:[%s4194_s27 + $0x90] sm:$0xff]  ;;  %v406_v59 = vld [vmem:[%s4194_s27 + $0x98] sm:$0xff]  ;;  %v403_v1 = vld [vmem:[%s4194_s27 + $0x80] sm:$0xff] }
  0x1b   : > { %641 = vrot.lane.b32.xlu1 %v614_v24, %s4095_s28  ;;  %v470_v30 = vrot.slane %v468_v20, 1  ;;  %v4221_v31 = vpack.c.bf16 %v400_v14, %v399_v13  ;;  %v432_v32 = vpack.c.bf16 %v401_v19, %v401_v19  ;;  %v617_v35 = vsel %vm608_vm1, %v615_v21, %v616_v22  ;;  %v407_v60 = vld [vmem:[%s4194_s27 + $0xa0] sm:$0x3]  ;;  %v402_v0 = vld [vmem:[%s4194_s27 + $0x78] sm:$0xff]  ;;  %v404_v2 = vld [vmem:[%s4194_s27 + $0x88] sm:$0x3] }
  0x1c   : > { %v466_v34 = vor.u32 %v465_v25, %v461_v17  ;;  %v477_v36 = vrot.slane %v475_v26, 1  ;;  %v482_v37 = vrot.slane %v480_v27, 1  ;;  %v4227_v41 = vpack.c.bf16 %v397_v29, %v396_v28  ;;  %v4255_v7 = vld [vmem:[%s5402_s1] sm:$0x3f]   ;;  %v413_v18 = vld [vmem:[%s4194_s27 + $0xd0] sm:$0x3] }
  0x1d   : > { %v497_v38 = vshrl.u32 %v4221_v31, 16  ;;  %v499_v39 = vshll.u32 %v4221_v31, 16  ;;  %v504_v40 = vshll.u32 %v432_v32, 16  ;;  %v430_v44 = vpack.c.bf16 %v398_v33, %v398_v33  ;;  %v411_v13 = vld [vmem:[%s4194_s27 + $0xc0] sm:$0xff]  ;;  %3913 = vmatprep.subr.msk.bf16.mxu0 %vm757_vm0, %v4255_v7  ;;  %v412_v22 = vld [vmem:[%s4194_s27 + $0xc8] sm:$0xff]  ;;  %s5429_s30 = smov (!%p376_p8, %s3188_s30), 31 }
  0x1e   : > { %v471_v42 = vsel %vm447_vm2, %v466_v34, %v470_v30  ;;  %v478_v43 = vor.u32 %v477_v36, %v473_v23  ;;  %v2817_v45 = vrot.slane %v396_v28, 1  ;;  %v485_v48 = vshrl.u32 %v4227_v41, 16  ;;  %v410_v26 = vld [vmem:[%s4194_s27 + $0xb8] sm:$0x3] }
  0x1f   : > { %570 = vrot.lane.b32.xlu0 %v471_v42, %s4096_s29  ;;  %643 = vrot.lane.b32.xlu1 %v617_v35, %s4095_s28  ;;  %v501_v46 = vrot.slane %v499_v39, 1  ;;  %v506_v47 = vrot.slane %v504_v40, 1  ;;  %v487_v49 = vshll.u32 %v4227_v41, 16  ;;  %v492_v51 = vshll.u32 %v430_v44, 16 }
  0x20   : > { %v483_v50 = vsel %vm447_vm2, %v478_v43, %v482_v37  ;;  %v2818_v52 = vrot.slane %v397_v29, 1  ;;  %v2820_v53 = vrot.slane %v398_v33, 1  ;;  %v621_v57 = vrot.slane %v4221_v31, 1  ;;  %v409_v37 = vld [vmem:[%s4194_s27 + $0xb0] sm:$0xff] }
  0x21   : > { %v502_v55 = vor.u32 %v501_v46, %v497_v38  ;;  %v489_v56 = vrot.slane %v487_v49, 1  ;;  %v622_v58 = vrot.slane %v432_v32, 1  ;;  %v494_v61 = vrot.slane %v492_v51, 1  ;;  %v408_v32 = vld [vmem:[%s4194_s27 + $0xa8] sm:$0xff] }
  0x22   : > { %v4240_v62 = vsel %vm608_vm1, %v2817_v45, %v2818_v52  ;;  %v4243_v63 = vsel %vm608_vm1, %v2818_v52, %v2820_v53  ;;  %v618_v8 = vrot.slane %v4227_v41, 1  ;;  %v619_v9 = vrot.slane %v430_v44, 1 }
  0x23   : > { %572 = vrot.lane.b32.xlu0 %v483_v50, %s4096_s29  ;;  %v507_v3 = vsel %vm447_vm2, %v502_v55, %v506_v47  ;;  %v490_v4 = vor.u32 %v489_v56, %v485_v48  ;;  %v2869_v5 = vpack.c.bf16 %v4243_v63, %v4240_v62  ;;  %v4259_v10 = vpack.c.bf16 %v406_v59, %v405_v54  ;;  %v414_v50 = vld [vmem:[%s4194_s27 + $0xd8] sm:$0xff]  ;;  %v415_v54 = vld [vmem:[%s4194_s27 + $0xe0] sm:$0xff]  ;;  %v416_v55 = vld [vmem:[%s4194_s27 + $0xe8] sm:$0x3] }
  0x24   : > { %576 = vrot.lane.b32.xlu1 %v507_v3, %s4096_s29  ;;  %v436_v12 = vpack.c.bf16 %v407_v60, %v407_v60  ;;  %v623_v15 = vsel %vm608_vm1, %v621_v57, %v622_v58  ;;  %v4264_v16 = vpack.c.bf16 %v403_v1, %v402_v0  ;;  %v434_v17 = vpack.c.bf16 %v404_v2, %v404_v2  ;;  %v417_v60 = vld [vmem:[%s4194_s27 + $0xf0] sm:$0xff]  ;;  %v419_v2 = vld [vmem:[%s4194_s27 + $0x100] sm:$0x3]  ;;  %v4046_v63 = vld [vmem:[%s4194_s27 + $0xb8] sm:$0x3] }
  0x25   : > { %v495_v14 = vsel %vm447_vm2, %v490_v4, %v494_v61  ;;  %v521_v19 = vshrl.u32 %v4259_v10, 16  ;;  %v523_v20 = vshll.u32 %v4259_v10, 16  ;;  %v620_v27 = vsel %vm608_vm1, %v618_v8, %v619_v9  ;;  %v418_v61 = vld [vmem:[%s4194_s27 + $0xf8] sm:$0xff]  ;;  %v387_v3 = vld [vmem:[%s4194_s27] sm:$0xff]  ;;  %v388_v4 = vld [vmem:[%s4194_s27 + $0x8] sm:$0xff] }
  0x26   : > { %v528_v21 = vshll.u32 %v436_v12, 16  ;;  %v509_v23 = vshrl.u32 %v4264_v16, 16  ;;  %v511_v24 = vshll.u32 %v4264_v16, 16  ;;  %v516_v25 = vshll.u32 %v434_v17, 16 }
  0x27   : > { %574 = vrot.lane.b32.xlu0 %v495_v14, %s4096_s29  ;;  %v525_v28 = vrot.slane %v523_v20, 1  ;;  %v627_v30 = vrot.slane %v4259_v10, 1  ;;  %v628_v35 = vrot.slane %v436_v12, 1  ;;  %v4280_v36 = vpack.c.bf16 %v412_v22, %v411_v13 }
  0x28   : > { %647 = vrot.lane.b32.xlu1 %v623_v15, %s4095_s28  ;;  %v530_v29 = vrot.slane %v528_v21, 1  ;;  %v513_v33 = vrot.slane %v511_v24, 1  ;;  %v518_v34 = vrot.slane %v516_v25, 1  ;;  %v624_v39 = vrot.slane %v4264_v16, 1  ;;  %v389_v21 = vld [vmem:[%s4194_s27 + $0x10] sm:$0x3] }
  0x29   : > { %v526_v38 = vor.u32 %v525_v28, %v521_v19  ;;  %v625_v40 = vrot.slane %v434_v17, 1  ;;  %v440_v42 = vpack.c.bf16 %v413_v18, %v413_v18  ;;  %v545_v44 = vshrl.u32 %v4280_v36, 16 }
  0x2a   : > { %v514_v43 = vor.u32 %v513_v33, %v509_v23  ;;  %v547_v45 = vshll.u32 %v4280_v36, 16  ;;  %v4288_v48 = vpack.c.bf16 %v409_v37, %v408_v32  ;;  %v438_v49 = vpack.c.bf16 %v410_v26, %v410_v26  ;;  %v422_v37 = vld [vmem:[%s4194_s27 + $0x118] sm:$0x3] }
  0x2b   : > { %645 = vrot.lane.b32.xlu0 %v620_v27, %s4095_s28  ;;  %v531_v46 = vsel %vm447_vm2, %v526_v38, %v530_v29  ;;  %v552_v47 = vshll.u32 %v440_v42, 16  ;;  %v629_v52 = vsel %vm608_vm1, %v627_v30, %v628_v35  ;;  %v626_v0 = vsel %vm608_vm1, %v624_v39, %v625_v40  ;;  %v420_v30 = vld [vmem:[%s4194_s27 + $0x108] sm:$0xff]  ;;  %v421_v35 = vld [vmem:[%s4194_s27 + $0x110] sm:$0xff] }
  0x2c   : > { %580 = vrot.lane.b32.xlu1 %v531_v46, %s4096_s29  ;;  %v519_v51 = vsel %vm447_vm2, %v514_v43, %v518_v34  ;;  %v549_v53 = vrot.slane %v547_v45, 1  ;;  %v533_v57 = vshrl.u32 %v4288_v48, 16  ;;  %v535_v58 = vshll.u32 %v4288_v48, 16 }
  0x2d   : > { %v554_v56 = vrot.slane %v552_v47, 1  ;;  %v540_v59 = vshll.u32 %v438_v49, 16  ;;  %v4305_v12 = vpack.c.bf16 %v415_v54, %v414_v50  ;;  %v442_v13 = vpack.c.bf16 %v416_v55, %v416_v55 }
  0x2e   : > { %v550_v1 = vor.u32 %v549_v53, %v545_v44  ;;  %v537_v8 = vrot.slane %v535_v58, 1  ;;  %v633_v14 = vrot.slane %v4280_v36, 1  ;;  %v634_v15 = vrot.slane %v440_v42, 1 }
  0x2f   : > { %578 = vrot.lane.b32.xlu0 %v519_v51, %s4096_s29  ;;  %v542_v9 = vrot.slane %v540_v59, 1  ;;  %v559_v19 = vshll.u32 %v4305_v12, 16  ;;  %v564_v20 = vshll.u32 %v442_v13, 16  ;;  %v630_v22 = vrot.slane %v4288_v48, 1 }
  0x30   : > { %651 = vrot.lane.b32.xlu1 %v629_v52, %s4095_s28  ;;  %v555_v17 = vsel %vm447_vm2, %v550_v1, %v554_v56  ;;  %v538_v18 = vor.u32 %v537_v8, %v533_v57  ;;  %v557_v23 = vshrl.u32 %v4305_v12, 16  ;;  %v4315_v24 = vpack.c.bf16 %v418_v61, %v417_v60 }
  0x31   : > { %v444_v25 = vpack.c.bf16 %v419_v2, %v419_v2  ;;  %v631_v27 = vrot.slane %v438_v49, 1  ;;  %v561_v28 = vrot.slane %v559_v19, 1  ;;  %v4318_v29 = vpack.c.bf16 %v388_v4, %v387_v3 }
  0x32   : > { %v543_v26 = vsel %vm447_vm2, %v538_v18, %v542_v9  ;;  %v636_v32 = vrot.slane %v4305_v12, 1  ;;  %v706_v33 = vshll.u32 %v4315_v24, 16  ;;  %v635_v38 = vsel %vm608_vm1, %v633_v14, %v634_v15 }
  0x33   : > { %649 = vrot.lane.b32.xlu0 %v626_v0, %s4095_s28  ;;  %v711_v34 = vshll.u32 %v444_v25, 16  ;;  %v566_v39 = vrot.slane %v564_v20, 1  ;;  %v637_v40 = vrot.slane %v442_v13, 1  ;;  %v424_v42 = vpack.c.bf16 %v389_v21, %v389_v21 }
  0x34   : > { %584 = vrot.lane.b32.xlu1 %v555_v17, %s4096_s29  ;;  %v562_v43 = vor.u32 %v561_v28, %v557_v23  ;;  %v704_v44 = vshrl.u32 %v4315_v24, 16  ;;  %v708_v45 = vrot.slane %v706_v33, 1  ;;  %v451_v46 = vshll.u32 %v4318_v29, 16  ;;  %v3962_v23 = vld [vmem:[%s5405_s4 + $0x100] sm:$0xff]  }
  0x35   : > { %v632_v47 = vsel %vm608_vm1, %v630_v22, %v631_v27  ;;  %v719_v49 = vrot.slane %v4315_v24, 1  ;;  %v456_v50 = vshll.u32 %v424_v42, 16  ;;  %v713_v51 = vrot.slane %v711_v34, 1  ;;  %3347 = vmatprep.subr.bf16.mxu1 %v3962_v23  ;;  %v3967_v27 = vld [vmem:[%s5405_s4 + $0xc8] sm:$0xff]   ;;  %v3972_v23 = vld [vmem:[%s5405_s4 + $0x50] sm:$0xff]  }
  0x36   : > { %v720_v52 = vrot.slane %v444_v25, 1  ;;  %v4333_v53 = vpack.c.bf16 %v421_v35, %v420_v30  ;;  %v638_v54 = vsel %vm608_vm1, %v636_v32, %v637_v40  ;;  %v449_v55 = vshrl.u32 %v4318_v29, 16  ;;  %v3963_v25 = vld [vmem:[%s5405_s4 + $0xc0] sm:$0xff]   ;;  %v3961_v40 = vld [vmem:[%s5402_s1 + $0xc] sm:$0x3f]  }
  0x37   : > { %582 = vrot.lane.b32.xlu0 %v543_v26, %s4096_s29  ;;  %v609_v56 = vrot.slane %v4318_v29, 1  ;;  %v446_v57 = vpack.c.bf16 %v422_v37, %v422_v37  ;;  %v567_v58 = vsel %vm447_vm2, %v562_v43, %v566_v39  ;;  %v709_v59 = vor.u32 %v708_v45, %v704_v44  ;;  %v3966_v26 = vld [vmem:[%s5405_s4 + $0x108] sm:$0xff]   ;;  %3348 = vmatpush3.bf16.msra.mxu1 %v3963_v25  ;;  %v3973_v25 = vld [vmem:[%s5405_s4 + $0x10] sm:$0xff]  }
  0x38   : > { %655 = vrot.lane.b32.xlu1 %v635_v38, %s4095_s28  ;;  %v453_v60 = vrot.slane %v451_v46, 1  ;;  %v610_v61 = vrot.slane %v424_v42, 1  ;;  %v458_v0 = vrot.slane %v456_v50, 1  ;;  %v998_v1 = vshrl.u32 %v4333_v53, 16  ;;  %3349 = vmatprep.subr.bf16.mxu1 %v3966_v26  ;;  %v3974_v26 = vld [vmem:[%s5405_s4 + $0x118] sm:$0xff]  }
  0x39   : > { %v1000_v2 = vshll.u32 %v4333_v53, 16  ;;  %v1005_v3 = vshll.u32 %v446_v57, 16  ;;  %v721_v4 = vsel %vm608_vm1, %v719_v49, %v720_v52  ;;  %v1013_v8 = vrot.slane %v4333_v53, 1 }
  0x3a   : > { %v1014_v9 = vrot.slane %v446_v57, 1  ;;  %v714_v13 = vsel %vm447_vm2, %v709_v59, %v713_v51  ;;  %v454_v14 = vor.u32 %v453_v60, %v449_v55  ;;  %v611_v18 = vsel %vm608_vm1, %v609_v56, %v610_v61 }
  0x3b   : > { %653 = vrot.lane.b32.xlu0 %v632_v47, %s4095_s28  ;;  %v1002_v15 = vrot.slane %v1000_v2, 1  ;;  %v1007_v17 = vrot.slane %v1005_v3, 1  ;;  %3350 = vmatpush3.bf16.msra.mxu1 %v3967_v27  ;;  %v882_v39 = vsel %vm757_vm0, %v4255_v7, 0  ;;  %v3975_v27 = vld [vmem:[%s5405_s4 + $0xd8] sm:$0xff]  }
  0x3c   : > { %657 = vrot.lane.b32.xlu1 %v638_v54, %s4095_s28  ;;  %v459_v19 = vsel %vm447_vm2, %v454_v14, %v458_v0  ;;  %v1015_v21 = vsel %vm608_vm1, %v1013_v8, %v1014_v9  ;;  %v1032_v14 = vsel %vm757_vm0, %v3961_v40, 0 }
  0x3d   : > { %v1003_v20 = vor.u32 %v1002_v15, %v998_v1  ;;  %v3964_v15 = vld [vmem:[%s5405_s4 + $0x40] sm:$0xff]  }
  0x3f   : > { %586 = vrot.lane.b32.xlu0 %v567_v58, %s4096_s29  ;;  %v1008_v22 = vsel %vm447_vm2, %v1003_v20, %v1007_v17  ;;  %v3968_v20 = vld [vmem:[%s5405_s4 + $0x48] sm:$0xff]  }
  0x40   : > { %722 = vrot.lane.b32.xlu1 %v721_v4, %s4095_s28 }
  0x43   : > { %715 = vrot.lane.b32.xlu0 %v714_v13, %s4096_s29 }
  0x44   : > { %639 = vrot.lane.b32.xlu1 %v611_v18, %s4095_s28 }
  0x47   : > { %568 = vrot.lane.b32.xlu0 %v459_v19, %s4096_s29 }
  0x48   : > { %1016 = vrot.lane.b32.xlu1 %v1015_v21, %s4095_s28  ;;  %v3969_v21 = vld [vmem:[%s5405_s4 + $0x8] sm:$0xff]  }
  0x4b   : > { %1009 = vrot.lane.b32.xlu0 %v1008_v22, %s4096_s29  ;;  %v3970_v22 = vld [vmem:[%s5405_s4 + $0x110] sm:$0xff]  }
  0x4c   : > { %3351 = vmatprep.subr.bf16.mxu1 %v3970_v22 }
  0x8d   : > { %v642_v28 = vpop.permute.xlu1 %641 }
  0x91   : > { %v571_v30 = vpop.permute.xlu0 %570  ;;  %v644_v32 = vpop.permute.xlu1 %643 }
  0x92   : > { %v663_v33 = vsel %vm659_vm3, %v4201_v6, %v571_v30  ;;  %v3977_v30 = vld [vmem:[%s5405_s4 + $0x18] sm:$0xff]  }
  0x93   : > { %v684_v34 = vsel %vm680_vm4, %v663_v33, %v642_v28  ;;  %v3976_v28 = vld [vmem:[%s5405_s4 + $0x58] sm:$0xff]   ;;  %v3979_v33 = vld [vmem:[%s5405_s4 + $0xe0] sm:$0xff]  }
  0x94   : > { %3598 = vmatprep.mubr.msk.bf16.mxu0 %vm736_vm5, %v684_v34 }
  0x95   : > { %v573_v35 = vpop.permute.xlu0 %572 }
  0x96   : > { %v665_v37 = vsel %vm659_vm3, %v4206_v11, %v573_v35  ;;  %v577_v38 = vpop.permute.xlu1 %576  ;;  %v3981_v35 = vld [vmem:[%s5405_s4 + $0x20] sm:$0xff]  }
  0x97   : > { %v686_v42 = vsel %vm680_vm4, %v665_v37, %v644_v32  ;;  %v669_v11 = vsel %vm659_vm3, %v4221_v31, %v577_v38  ;;  %v3978_v32 = vld [vmem:[%s5405_s4 + $0x120] sm:$0xff]   ;;  %v3982_v37 = vld [vmem:[%s5405_s4 + $0x128] sm:$0xff]  }
  0x98   : > { %3599 = vmatmul.mubr.msk.bf16.vlgmr.msra.gmra.mrb[0].mxu0 %vm736_vm5, %v686_v42  ;;  %v3983_v38 = vld [vmem:[%s5405_s4 + $0xe8] sm:$0xff]  }
  0x99   : > { %3619 = vmatpush3.bf16.msra.mxu0 %v882_v39  ;;  %v575_v6 = vpop.permute.xlu0 %574  ;;  %v3984_v39 = vld [vmem:[%s5405_s4 + $0x68] sm:$0xff]  }
  0x9a   : > { %v648_v43 = vpop.permute.xlu1 %647  ;;  %3914 = vmatprep.subr.msk.bf16.mxu0 %vm757_vm0, %v3961_v40  ;;  %v667_v44 = vsel %vm659_vm3, %v4227_v41, %v575_v6  ;;  %v3985_v40 = vld [vmem:[%s5405_s4 + $0x28] sm:$0xff]   ;;  %v3987_v6 = vld [vmem:[%s5405_s4 + $0xf0] sm:$0xff]  }
  0x9b   : > { %v690_v46 = vsel %vm680_vm4, %v669_v11, %v648_v43  ;;  %v3988_v43 = vld [vmem:[%s5405_s4 + $0x70] sm:$0xff]  }
  0x9c   : > { %v3989_v11 = vld [vmem:[%s5405_s4 + $0x30] sm:$0xff]  }
  0x9d   : > { %v646_v7 = vpop.permute.xlu0 %645 }
  0x9e   : > { %v688_v45 = vsel %vm680_vm4, %v667_v44, %v646_v7  ;;  %v581_v47 = vpop.permute.xlu1 %580  ;;  %v3990_v44 = vld [vmem:[%s5405_s4 + $0x138] sm:$0xff]  }
  0x9f   : > { %3602 = vmatprep.mubr.msk.bf16.mxu0 %vm736_vm5, %v688_v45  ;;  %v673_v51 = vsel %vm659_vm3, %v4259_v10, %v581_v47  ;;  %v3991_v7 = vld [vmem:[%s5405_s4 + $0xf8] sm:$0xff]   ;;  %v4529_v47 = vld [vmem:[%s5405_s4 + $0x140] sm:$0xff]  }
  0xa0   : > { %3603 = vmatmul.mubr.msk.bf16.gmra.mrb[4].mxu0 %vm736_vm5, %v690_v46 }
  0xa1   : > { %v579_v49 = vpop.permute.xlu0 %578 }
  0xa2   : > { %v652_v50 = vpop.permute.xlu1 %651  ;;  %v671_v31 = vsel %vm659_vm3, %v4264_v16, %v579_v49  ;;  %v4535_v49 = vld [vmem:[%s5405_s4 + $0x1c0] sm:$0xff]  }
  0xa3   : > { %v694_v54 = vsel %vm680_vm4, %v673_v51, %v652_v50  ;;  %v4544_v50 = vld [vmem:[%s5403_s2] ss:$0 sm:$0xff] }
  0xa5   : > { %v650_v52 = vpop.permute.xlu0 %649 }
  0xa6   : > { %v692_v41 = vsel %vm680_vm4, %v671_v31, %v650_v52  ;;  %v585_v55 = vpop.permute.xlu1 %584  ;;  %v4549_v31 = vld [vmem:[%s5404_s3] ss:$0 sm:$0xff] }
  0xa7   : > { %3606 = vmatprep.mubr.msk.bf16.mxu0 %vm736_vm5, %v692_v41  ;;  %v677_v58 = vsel %vm659_vm3, %v4280_v36, %v585_v55 }
  0xa8   : > { %3607 = vmatmul.mubr.msk.bf16.gmra.mrb[8].mxu0 %vm736_vm5, %v694_v54 }
  0xa9   : > { %v583_v56 = vpop.permute.xlu0 %582 }
  0xaa   : > { %v656_v57 = vpop.permute.xlu1 %655  ;;  %v675_v10 = vsel %vm659_vm3, %v4288_v48, %v583_v56 }
  0xab   : > { %v698_v60 = vsel %vm680_vm4, %v677_v58, %v656_v57 }
  0xad   : > { %v654_v59 = vpop.permute.xlu0 %653 }
  0xae   : > { %v696_v16 = vsel %vm680_vm4, %v675_v10, %v654_v59  ;;  %v658_v61 = vpop.permute.xlu1 %657  ;;  %v1243_v59 = vstv %s1242_s22 }
  0xaf   : > { %3610 = vmatprep.mubr.msk.bf16.mxu0 %vm736_vm5, %v696_v16  ;;  %vm1244_vm6 = vcmp.eq.s32.totalorder %v1243_v59, 1 }
  0xb0   : > { %3611 = vmatmul.mubr.msk.bf16.gmra.mrb[12].mxu0 %vm736_vm5, %v698_v60 }
  0xb1   : > { %v587_v0 = vpop.permute.xlu0 %586 }
  0xb2   : > { %v679_v1 = vsel %vm659_vm3, %v4305_v12, %v587_v0  ;;  %v723_v36 = vpop.permute.xlu1 %722 }
  0xb3   : > { %v700_v2 = vsel %vm680_vm4, %v679_v1, %v658_v61 }
  0xb4   : > { %3614 = vmatprep.mubr.msk.bf16.mxu0 %vm736_vm5, %v700_v2 }
  0xb5   : > { %v716_v48 = vpop.permute.xlu0 %715 }
  0xb6   : > { %v725_v3 = vsel %vm659_vm3, %v4315_v24, %v716_v48  ;;  %v640_v8 = vpop.permute.xlu1 %639  ;;  %v3965_v24 = vld [vmem:[%s5405_s4] sm:$0xff]  }
  0xb7   : > { %v727_v4 = vsel %vm680_vm4, %v725_v3, %v723_v36 }
  0xb8   : > { %3615 = vmatmul.mubr.msk.bf16.gmra.mrb[16].mxu0 %vm736_vm5, %v727_v4 }
  0xb9   : > { %v569_v9 = vpop.permute.xlu0 %568 }
  0xba   : > { %v661_v13 = vsel %vm659_vm3, %v4318_v29, %v569_v9  ;;  %v1017_v18 = vpop.permute.xlu1 %1016 }
  0xbb   : > { %v682_v12 = vsel %vm680_vm4, %v661_v13, %v640_v8 }
  0xbc   : > { %3620 = vmatprep.mubr.msk.bf16.mxu0 %vm736_vm5, %v682_v12 }
  0xbd   : > { %v1010_v29 = vpop.permute.xlu0 %1009 }
  0xbe   : > { %v1019_v17 = vsel %vm659_vm3, %v4333_v53, %v1010_v29  ;;  %v3971_v53 = vld [vmem:[%s5405_s4 + $0xd0] sm:$0xff]  }
  0xbf   : > { %v1021_v19 = vsel %vm680_vm4, %v1019_v17, %v1017_v18  ;;  %3352 = vmatpush3.bf16.msra.mxu1 %v3971_v53 }
  0xc0   : > { %3621 = vmatmul.mubr.msk.bf16.vlgmr.msra.gmra.mrb[0].mxu0 %vm736_vm5, %v684_v34  ;;  %3353 = vmatprep.subr.bf16.mxu1 %v3974_v26  ;;  %v3980_v34 = vld [vmem:[%s5405_s4 + $0x60] sm:$0xff]  }
  0xc1   : > { %3641 = vmatpush3.bf16.msra.mxu0 %v1032_v14  ;;  %3624 = vmatprep.mubr.msk.bf16.mxu0 %vm736_vm5, %v686_v42 }
  0xc2   : > { %3427 = vmatprep.subr.bf16.mxu0 %v3964_v15 }
  0xc3   : > { %3354 = vmatpush3.bf16.msra.mxu1 %v3975_v27 }
  0xc4   : > { %3355 = vmatprep.subr.bf16.mxu1 %v3978_v32 }
  0xc7   : > { %3356 = vmatpush3.bf16.msra.mxu1 %v3979_v33 }
  0xc8   : > { %3625 = vmatmul.mubr.msk.bf16.gmra.mrb[4].mxu0 %vm736_vm5, %v688_v45  ;;  %3357 = vmatprep.subr.bf16.mxu1 %v3982_v37 }
  0xc9   : > { %3628 = vmatprep.mubr.msk.bf16.mxu0 %vm736_vm5, %v690_v46 }
  0xcb   : > { %3358 = vmatpush3.bf16.msra.mxu1 %v3983_v38 }
  0xd0   : > { %3629 = vmatmul.mubr.msk.bf16.gmra.mrb[8].mxu0 %vm736_vm5, %v692_v41 }
  0xd1   : > { %3632 = vmatprep.mubr.msk.bf16.mxu0 %vm736_vm5, %v694_v54 }
  0xd8   : > { %3633 = vmatmul.mubr.msk.bf16.gmra.mrb[12].mxu0 %vm736_vm5, %v696_v16 }
  0xd9   : > { %3636 = vmatprep.mubr.msk.bf16.mxu0 %vm736_vm5, %v698_v60 }
  0xe0   : > { %3637 = vmatmul.mubr.msk.bf16.gmra.mrb[16].mxu0 %vm736_vm5, %v700_v2 }
  0xe1   : > { %3642 = vmatprep.mubr.msk.bf16.mxu0 %vm736_vm5, %v686_v42  ;;  %v3986_v42 = vld [vmem:[%s5405_s4 + $0x130] sm:$0xff]  }
  0xe2   : > { %3359 = vmatprep.subr.bf16.mxu1 %v3986_v42 }
  0xe3   : > { %3360 = vmatpush3.bf16.msra.mxu1 %v3987_v6 }
  0xe4   : > { %3361 = vmatprep.subr.bf16.mxu1 %v3990_v44 }
  0xe7   : > { %3362 = vmatpush3.bf16.msra.mxu1 %v3991_v7 }
  0xe8   : > { %3643 = vmatmul.mubr.msk.bf16.vlgmr.msra.gmra.mrb[0].mxu0 %vm736_vm5, %v688_v45  ;;  %v3992_v45 = vld [vmem:[%s5405_s4 + $0x78] sm:$0xff]   ;;  %3662 = vmatprep.subr.bf16.mxu1 %v4529_v47 }
  0xe9   : > { %3646 = vmatprep.mubr.msk.bf16.mxu0 %vm736_vm5, %v690_v46  ;;  %3428 = vmatpush3.bf16.msra.mxu0 %v3965_v24  ;;  %v3993_v46 = vld [vmem:[%s5405_s4 + $0x38] sm:$0xff]  }
  0xea   : > { %3429 = vmatprep.subr.bf16.mxu0 %v3968_v20 }
  0xed   : > { %3430 = vmatpush3.bf16.msra.mxu0 %v3969_v21 }
  0xee   : > { %3431 = vmatprep.subr.bf16.mxu0 %v3972_v23 }
  0xf0   : > { %3647 = vmatmul.mubr.msk.bf16.gmra.mrb[4].mxu0 %vm736_vm5, %v692_v41 }
  0xf1   : > { %3650 = vmatprep.mubr.msk.bf16.mxu0 %vm736_vm5, %v694_v54  ;;  %3432 = vmatpush3.bf16.msra.mxu0 %v3973_v25 }
  0xf2   : > { %3433 = vmatprep.subr.bf16.mxu0 %v3976_v28 }
  0xf5   : > { %3434 = vmatpush3.bf16.msra.mxu0 %v3977_v30 }
  0xf6   : > { %3435 = vmatprep.subr.bf16.mxu0 %v3980_v34 }
  0xf8   : > { %3651 = vmatmul.mubr.msk.bf16.gmra.mrb[8].mxu0 %vm736_vm5, %v696_v16 }
  0xf9   : > { %3654 = vmatprep.mubr.msk.bf16.mxu0 %vm736_vm5, %v698_v60  ;;  %3436 = vmatpush3.bf16.msra.mxu0 %v3981_v35 }
  0xfa   : > { %3437 = vmatprep.subr.bf16.mxu0 %v3984_v39 }
  0xfd   : > { %3438 = vmatpush3.bf16.msra.mxu0 %v3985_v40 }
  0xfe   : > { %3439 = vmatprep.subr.bf16.mxu0 %v3988_v43 }
 0x100   : > { %3655 = vmatmul.mubr.msk.bf16.gmra.mrb[12].mxu0 %vm736_vm5, %v700_v2 }
 0x101   : > { %3658 = vmatprep.mubr.msk.bf16.mxu0 %vm736_vm5, %v727_v4  ;;  %3440 = vmatpush3.bf16.msra.mxu0 %v3989_v11 }
 0x102   : > { %3441 = vmatprep.subr.bf16.mxu0 %v3992_v45 }
 0x105   : > { %3442 = vmatpush3.bf16.msra.mxu0 %v3993_v46 }
 0x106   : > { %3507 = vmatprep.subr.bf16.mxu0 %v4535_v49 }
 0x108   : > { %3659 = vmatmul.mubr.msk.bf16.gmra.mrb[16].mxu0 %vm736_vm5, %v1021_v19 }
 0x1bb   : > { %v3644_v51 = vpop.f32.mrb[0].mxu0 }
 0x1bc   : > { %v1176_v52 = vmul.f32 %v3644_v51, %v4544_v50  ;;  %v1068_v41 = vpop.f32.mrb[1].mxu0 }
 0x1bd   : > { %v1174_v54 = vmul.f32 %v4544_v50, %v1068_v41  ;;  %v3645_v55 = vpop.f32.mrb[2].mxu0 }
 0x1be   : > { %v1203_v56 = vadd.f32 %v4549_v31, %v1176_v52  ;;  %v1177_v57 = vmul.f32 %v3645_v55, %v4544_v50  ;;  %v1071_v58 = vpop.f32.mrb[3].mxu0 }
 0x1bf   : > { %v1201_v10 = vadd.f32 %v4549_v31, %v1174_v54  ;;  %v1175_v16 = vmul.f32 %v4544_v50, %v1071_v58 }
 0x1c0   : > { %v1204_v60 = vadd.f32 %v4549_v31, %v1177_v57  ;;  %v1223_v1 = vmax.f32 %v1203_v56, 0.0 }
 0x1c1   : > { %v1221_v61 = vmax.f32 %v1201_v10, 0.0  ;;  %v1202_v0 = vadd.f32 %v4549_v31, %v1175_v16 }
 0x1c2   : > { %v1224_v2 = vmax.f32 %v1204_v60, 0.0 }
 0x1c3   : > { %v1222_v36 = vmax.f32 %v1202_v0, 0.0  ;;  %v3648_v48 = vpop.f32.mrb[4].mxu0  ;;  %v1245_v9 = vsel %vm1244_vm6, %v1221_v61, 0.0 }
 0x1c4   : > { %v1255_v3 = vpack.c.bf16 %v1224_v2, %v1223_v1  ;;  %v1180_v4 = vmul.f32 %v3648_v48, %v4544_v50  ;;  %v1084_v8 = vpop.f32.mrb[5].mxu0 }
 0x1c5   : > { %v1246_v13 = vsel %vm1244_vm6, %v1222_v36, 0.0  ;;  %v1178_v12 = vmul.f32 %v4544_v50, %v1084_v8  ;;  %v3649_v14 = vpop.f32.mrb[6].mxu0 }
 0x1c6   : > { %v1272_v15 = vshrl.u32 %v1255_v3, 16  ;;  %v1254_v24 = vpack.c.bf16 %v1246_v13, %v1245_v9  ;;  %v1087_v29 = vpop.f32.mrb[7].mxu0  ;;  %v1207_v17 = vadd.f32 %v4549_v31, %v1180_v4  ;;  %v1181_v19 = vmul.f32 %v3649_v14, %v4544_v50 }
 0x1c7   : > { %v1205_v18 = vadd.f32 %v4549_v31, %v1178_v12  ;;  %v1179_v20 = vmul.f32 %v4544_v50, %v1087_v29  ;;  %v1275_v22 = vshll.u32 %v1255_v3, 16 }
 0x1c8   : > { %v1274_v21 = vrot.slane %v1272_v15, 7  ;;  %v1265_v53 = vshrl.u32 %v1254_v24, 16  ;;  %v1208_v25 = vadd.f32 %v4549_v31, %v1181_v19  ;;  %v1268_v30 = vshll.u32 %v1254_v24, 16 }
 0x1c9   : > { %v1206_v26 = vadd.f32 %v4549_v31, %v1179_v20  ;;  %v1227_v32 = vmax.f32 %v1207_v17, 0.0  ;;  %v1225_v33 = vmax.f32 %v1205_v18, 0.0 }
 0x1ca   : > { %v1277_v27 = vor.u32 %v1275_v22, %v1274_v21  ;;  %v1267_v28 = vrot.slane %v1265_v53, 7  ;;  %v1228_v34 = vmax.f32 %v1208_v25, 0.0  ;;  %v4578_v6 = vsel %vm4565_vm9, %v1274_v21, 0  ;;  %v3995_v22 = vld [vmem:[%s5405_s4 + $0x148] sm:$0xff]  }
 0x1cb   : > { %v1226_v35 = vmax.f32 %v1206_v26, 0.0  ;;  %v3652_v37 = vpop.f32.mrb[8].mxu0  ;;  %v1397_v55 = vshll.u32 %v4578_v6, 16 }
 0x1cc   : > { %v4573_v38 = vsel %vm4565_vm9, 0, %v1277_v27  ;;  %v1270_v39 = vor.u32 %v1268_v30, %v1267_v28  ;;  %v1184_v40 = vmul.f32 %v3652_v37, %v4544_v50  ;;  %v1100_v42 = vpop.f32.mrb[9].mxu0  ;;  %v1257_v43 = vpack.c.bf16 %v1228_v34, %v1227_v32 }
 0x1cd   : > { %v1256_v11 = vpack.c.bf16 %v1226_v35, %v1225_v33  ;;  %v1182_v44 = vmul.f32 %v4544_v50, %v1100_v42  ;;  %v3653_v7 = vpop.f32.mrb[10].mxu0  ;;  %v1392_v52 = vshll.u32 %v4573_v38, 16  ;;  %v4591_v56 = vsel %vm4565_vm9, %v1267_v28, 0 }
 0x1ce   : > { %v1211_v45 = vadd.f32 %v4549_v31, %v1184_v40  ;;  %v1185_v46 = vmul.f32 %v3653_v7, %v4544_v50  ;;  %v1103_v51 = vpop.f32.mrb[11].mxu0  ;;  %v1286_v41 = vshrl.u32 %v1257_v43, 16  ;;  %v4595_v57 = vsel %vm4565_vm9, 0, %v1270_v39  ;;  %v3996_v7 = vld [vmem:[%s5405_s4 + $0x150] sm:$0xff]  }
 0x1cf   : > { %v1279_v54 = vshrl.u32 %v1256_v11, 16  ;;  %v1209_v58 = vadd.f32 %v4549_v31, %v1182_v44  ;;  %v1183_v59 = vmul.f32 %v4544_v50, %v1103_v51  ;;  %v1282_v60 = vshll.u32 %v1256_v11, 16 }
 0x1d0   : > { %v1212_v10 = vadd.f32 %v4549_v31, %v1185_v46  ;;  %v1390_v61 = vshrl.u32 %v4573_v38, 16  ;;  %v1394_v0 = vrot.slane %v1392_v52, 1  ;;  %v4602_v1 = vrot.slane %v1286_v41, 7 }
 0x1d1   : > { %v1281_v16 = vrot.slane %v1279_v54, 7  ;;  %v1231_v2 = vmax.f32 %v1211_v45, 0.0  ;;  %v1210_v48 = vadd.f32 %v4549_v31, %v1183_v59  ;;  %v1229_v3 = vmax.f32 %v1209_v58, 0.0 }
 0x1d2   : > { %v1232_v36 = vmax.f32 %v1212_v10, 0.0  ;;  %v1395_v8 = vor.u32 %v1394_v0, %v1390_v61  ;;  %v1399_v9 = vrot.slane %v1397_v55, 1  ;;  %v1380_v13 = vshll.u32 %v4595_v57, 16  ;;  %v4650_v10 = vld [vmem:[%s5405_s4 + $0x180] sm:$0xff]  }
 0x1d3   : > { %v3656_v4 = vpop.f32.mrb[12].mxu0  ;;  %v1284_v12 = vor.u32 %v1282_v60, %v1281_v16  ;;  %v1230_v15 = vmax.f32 %v1210_v48, 0.0  ;;  %v1289_v17 = vshll.u32 %v1257_v43, 16  ;;  %v1378_v21 = vshrl.u32 %v4595_v57, 16 }
 0x1d4   : > { %v4606_v14 = vpack.c.bf16 %v1232_v36, %v1231_v2  ;;  %v1188_v24 = vmul.f32 %v3656_v4, %v4544_v50  ;;  %v1116_v29 = vpop.f32.mrb[13].mxu0  ;;  %v1400_v19 = vsel %vm447_vm2, %v1395_v8, %v1399_v9  ;;  %v1385_v28 = vshll.u32 %v4591_v56, 16  ;;  %v3997_v9 = vld [vmem:[%s5405_s4 + $0x158] sm:$0xff]  }
 0x1d5   : > { %v1186_v18 = vmul.f32 %v4544_v50, %v1116_v29  ;;  %v3657_v20 = vpop.f32.mrb[14].mxu0  ;;  %v1258_v25 = vpack.c.bf16 %v1230_v15, %v1229_v3  ;;  %1820 = vmatprep.mubr.bf16.mxu1 %v1400_v19  ;;  %v1382_v34 = vrot.slane %v1380_v13, 1  ;;  %v1291_v35 = vor.u32 %v1289_v17, %v4602_v1 }
 0x1d6   : > { %v1300_v53 = vshrl.u32 %v4606_v14, 16  ;;  %v1215_v26 = vadd.f32 %v4549_v31, %v1188_v24  ;;  %v1119_v27 = vpop.f32.mrb[15].mxu0  ;;  %v1189_v32 = vmul.f32 %v3657_v20, %v4544_v50  ;;  %1821 = vmatmul.mubr.bf16.vlgmr.msra.gmra.mrb[0].mxu1 %v4573_v38  ;;  %v4629_v37 = vsel %vm4565_vm9, 0, %v1284_v12  ;;  %v4683_v20 = vld [vmem:[%s5405_s4 + $0x188] sm:$0xff]  }
 0x1d7   : > { %v1213_v30 = vadd.f32 %v4549_v31, %v1186_v18  ;;  %v1187_v33 = vmul.f32 %v4544_v50, %v1119_v27  ;;  %v1293_v39 = vshrl.u32 %v1258_v25, 16  ;;  %3663 = vmatpush3.bf16.msra.mxu1 %v4529_v47  ;;  %v1250_v40 = vstv %s4611_s24  ;;  %s379_s24 = sadd.s32 %s3189_s13, %s5429_s30 }
 0x1d8   : > { %v4633_v42 = vrot.slane %v1300_v53, 7  ;;  %v1216_v43 = vadd.f32 %v4549_v31, %v1189_v32  ;;  %v1383_v44 = vor.u32 %v1382_v34, %v1378_v21  ;;  %3664 = vmatprep.subr.bf16.mxu1 %v3995_v22  ;;  %v1235_v46 = vmax.f32 %v1215_v26, 0.0  ;;  %v4702_v34 = vld [vmem:[%s5405_s4 + $0x1d0] sm:$0xff]   ;;  %s3190_s26 = sshll.u32 %s379_s24, 3 }
 0x1d9   : > { %v1214_v11 = vadd.f32 %v4549_v31, %v1187_v33  ;;  %v4640_v45 = vrot.slane %v1293_v39, 7  ;;  %v1233_v51 = vmax.f32 %v1213_v30, 0.0  ;;  %v1387_v52 = vrot.slane %v1385_v28, 1  ;;  %v3998_v28 = vld [vmem:[%s5405_s4 + $0x160] sm:$0xff]   ;;  %s5298_s29 = scalar_lea.vmem %s5411_s10, %s3190_s26 }
 0x1da   : > { %v1236_v41 = vmax.f32 %v1216_v43, 0.0  ;;  %v4644_v55 = vsel %vm4565_vm9, %v1281_v16, 0  ;;  %v1404_v58 = vshll.u32 %v4629_v37, 16  ;;  %v1303_v59 = vshll.u32 %v4606_v14, 16  ;;  %v4658_v16 = vld [vmem:[%s5405_s4 + $0x1c8] sm:$0xff]   ;;  %v4724_v43 = vld [vmem:[%s5405_s4 + $0x190] sm:$0xff]  }
 0x1db   : > { %v1234_v47 = vmax.f32 %v1214_v11, 0.0  ;;  %v3660_v54 = vpop.f32.mrb[16].mxu0  ;;  %v1296_v60 = vshll.u32 %v1258_v25, 16  ;;  %v1388_v61 = vsel %vm447_vm2, %v1383_v44, %v1387_v52  ;;  %3665 = vmatpush3.bf16.msra.mxu1 %v3995_v22  ;;  %v1402_v14 = vshrl.u32 %v4629_v37, 16 }
 0x1dc   : > { %v1192_v0 = vmul.f32 %v3660_v54, %v4544_v50  ;;  %v1132_v2 = vpop.f32.mrb[17].mxu0  ;;  %v4660_v36 = vpack.c.bf16 %v1236_v41, %v1235_v46  ;;  %2158 = vmatprep.mubr.bf16.mxu0 %v1388_v61  ;;  %v1406_v8 = vrot.slane %v1404_v58, 1  ;;  %3666 = vmatprep.subr.bf16.mxu1 %v3996_v7  ;;  %v1409_v15 = vshll.u32 %v4644_v55, 16 }
 0x1dd   : > { %v4662_v48 = vpack.c.bf16 %v1234_v47, %v1233_v51  ;;  %v1190_v3 = vmul.f32 %v4544_v50, %v1132_v2  ;;  %v3661_v4 = vpop.f32.mrb[18].mxu0  ;;  %2159 = vmatmul.mubr.bf16.vlgmr.msra.gmra.mrb[20].mxu0 %v4595_v57  ;;  %v1305_v29 = vor.u32 %v1303_v59, %v4633_v42  ;;  %v1298_v17 = vor.u32 %v1296_v60, %v4640_v45 }
 0x1de   : > { %v1219_v13 = vadd.f32 %v4549_v31, %v1192_v0  ;;  %v1193_v12 = vmul.f32 %v3661_v4, %v4544_v50  ;;  %v1135_v24 = vpop.f32.mrb[19].mxu0  ;;  %2166 = vmatprep.mubr.bf16.mxu0 %v1400_v19  ;;  %vm4675_vm10 = vcmp.eq.s32.totalorder %v1250_v40, 1  ;;  %3508 = vmatpush3.bf16.msra.mxu0 %v4650_v10  ;;  %v1407_v53 = vor.u32 %v1406_v8, %v1402_v14  ;;  %v4760_v4 = vld [vmem:[%s5405_s4 + $0x198] sm:$0xff]  }
 0x1df   : > { %3667 = vmatpush3.bf16.msra.mxu1 %v3996_v7  ;;  %3509 = vmatprep.subr.bf16.mxu0 %v4658_v16  ;;  %v4689_v19 = vsel %vm4565_vm9, 0, %v1291_v35  ;;  %v1307_v25 = vshrl.u32 %v4662_v48, 16  ;;  %v1217_v26 = vadd.f32 %v4549_v31, %v1190_v3  ;;  %v1411_v27 = vrot.slane %v1409_v15, 1 }
 0x1e0   : > { %v1239_v21 = vmax.f32 %v1219_v13, 0.0  ;;  %v1220_v22 = vadd.f32 %v4549_v31, %v1193_v12  ;;  %3668 = vmatprep.subr.bf16.mxu1 %v3997_v9  ;;  %v1191_v33 = vmul.f32 %v4544_v50, %v1135_v24  ;;  %v4706_v35 = vsel %vm4565_vm9, 0, %v1305_v29  ;;  %v4769_v13 = vld [vmem:[%s5405_s4 + $0x1e0] sm:$0xff]   ;;  %v4008_v29 = vld [vmem:[%s5405_s4 + $0x170] sm:$0xff]  }
 0x1e1   : > { %v4710_v39 = vsel %vm4565_vm9, 0, %v1298_v17  ;;  %v4713_v40 = vsel %vm447_vm2, %v1407_v53, %v1411_v27  ;;  %v4718_v50 = vsel %vm4565_vm9, %v4602_v1, 0  ;;  %v1314_v11 = vshrl.u32 %v4660_v36, 16  ;;  %v4735_v1 = vld [vmem:[%s5405_s4 + $0x1d8] sm:$0xff]   ;;  %v4798_v27 = vld [vmem:[%s5405_s4 + $0x1e8] sm:$0xff]  }
 0x1e2   : > { %v1252_v30 = vsel %vm4675_vm10, %v1239_v21, 0.0  ;;  %v1240_v32 = vmax.f32 %v1220_v22, 0.0  ;;  %3510 = vmatpush3.bf16.msra.mxu0 %v4683_v20  ;;  %1828 = vmatprep.mubr.bf16.mxu1 %v4713_v40  ;;  %v1218_v7 = vadd.f32 %v4549_v31, %v1191_v33  ;;  %v1416_v46 = vshll.u32 %v4689_v19, 16  ;;  %v4003_v31 = vld [vmem:[%s5405_s4 + $0x168] sm:$0xff]   ;;  %v4013_v33 = vld [vmem:[%s5405_s4 + $0x178] sm:$0xff]  }
 0x1e3   : > { %3669 = vmatpush3.bf16.msra.mxu1 %v3997_v9  ;;  %v4737_v51 = vrot.slane %v1307_v25, 7  ;;  %v1237_v52 = vmax.f32 %v1217_v26, 0.0  ;;  %v1421_v47 = vshll.u32 %v4718_v50, 16  ;;  %v1414_v58 = vshrl.u32 %v4689_v19, 16  ;;  %3511 = vmatprep.subr.bf16.mxu0 %v4702_v34  ;;  %v4787_v25 = vld [vmem:[%s5405_s4 + $0x1a0] sm:$0xff]  }
 0x1e4   : > { %v1253_v44 = vsel %vm4675_vm10, %v1240_v32, 0.0  ;;  %1829 = vmatmul.mubr.bf16.gmra.mrb[4].mxu1 %v4629_v37  ;;  %3670 = vmatprep.subr.bf16.mxu1 %v3998_v28  ;;  %v1238_v54 = vmax.f32 %v1218_v7, 0.0  ;;  %v1418_v59 = vrot.slane %v1416_v46, 1  ;;  %v4749_v60 = vsel %vm4565_vm9, %v4640_v45, 0 }
 0x1e5   : > { %v1263_v41 = vpack.c.bf16 %v1253_v44, %v1252_v30  ;;  %2167 = vmatmul.mubr.bf16.gmra.mrb[24].mxu0 %v4573_v38  ;;  %v1310_v61 = vshll.u32 %v4662_v48, 16  ;;  %v1426_v2 = vshrl.u32 %v4710_v39, 16  ;;  %v1428_v3 = vshll.u32 %v4710_v39, 16 }
 0x1e6   : > { %2174 = vmatprep.mubr.bf16.mxu0 %v4713_v40  ;;  %3512 = vmatpush3.bf16.msra.mxu0 %v4724_v43  ;;  %v4762_v45 = vpack.c.bf16 %v1238_v54, %v1237_v52  ;;  %v1419_v8 = vor.u32 %v1418_v59, %v1414_v58  ;;  %v1423_v9 = vrot.slane %v1421_v47, 1  ;;  %v1433_v48 = vshll.u32 %v4749_v60, 16  ;;  %v4827_v52 = vld [vmem:[%s5405_s4 + $0x1a8] sm:$0xff]   ;;  %v4840_v54 = vld [vmem:[%s5405_s4 + $0x80] sm:$0xff]  }
 0x1e7   : > { %v1328_v0 = vshrl.u32 %v1263_v41, 16  ;;  %3671 = vmatpush3.bf16.msra.mxu1 %v3998_v28  ;;  %3513 = vmatprep.subr.bf16.mxu0 %v4735_v1  ;;  %v1331_v14 = vshll.u32 %v1263_v41, 16  ;;  %v1430_v15 = vrot.slane %v1428_v3, 1  ;;  %v1440_v24 = vshll.u32 %v4706_v35, 16 }
 0x1e8   : > { %3672 = vmatprep.subr.bf16.mxu1 %v4003_v31  ;;  %v1312_v17 = vor.u32 %v1310_v61, %v4737_v51  ;;  %v4779_v18 = vsel %vm447_vm2, %v1419_v8, %v1423_v9  ;;  %v1435_v53 = vrot.slane %v1433_v48, 1  ;;  %v4792_v26 = vsel %vm4565_vm9, %v4633_v42, 0 }
 0x1e9   : > { %v4771_v12 = vrot.slane %v1328_v0, 7  ;;  %1836 = vmatprep.mubr.bf16.mxu1 %v4779_v18  ;;  %v1431_v22 = vor.u32 %v1430_v15, %v1426_v2  ;;  %v4800_v28 = vrot.slane %v1314_v11, 7  ;;  %v1442_v42 = vrot.slane %v1440_v24, 1  ;;  %v4849_v2 = vld [vmem:[%s5405_s4 + $0x1b0] sm:$0xff]   ;;  %v4883_v24 = vld [vmem:[%s5405_s4 + $0x1b8] sm:$0xff]  }
 0x1ea   : > { %3514 = vmatpush3.bf16.msra.mxu0 %v4760_v4  ;;  %v4815_v44 = vsel %vm4565_vm9, 0, %v1312_v17  ;;  %v1317_v11 = vshll.u32 %v4660_v36, 16  ;;  %v1438_v7 = vshrl.u32 %v4706_v35, 16  ;;  %v1445_v46 = vshll.u32 %v4792_v26, 16  ;;  %v4833_v36 = vld [vmem:[%s5405_s4 + $0x1f0] sm:$0xff]  }
 0x1eb   : > { %v1333_v21 = vor.u32 %v1331_v14, %v4771_v12  ;;  %3673 = vmatpush3.bf16.msra.mxu1 %v4003_v31  ;;  %3515 = vmatprep.subr.bf16.mxu0 %v4769_v13  ;;  %v4808_v32 = vsel %vm447_vm2, %v1431_v22, %v1435_v53  ;;  %v1452_v31 = vshll.u32 %v4815_v44, 16  ;;  %v1321_v58 = vshrl.u32 %v4762_v45, 16 }
 0x1ec   : > { %1837 = vmatmul.mubr.bf16.gmra.mrb[8].mxu1 %v4689_v19  ;;  %3674 = vmatprep.subr.bf16.mxu1 %v4008_v29  ;;  %v1319_v41 = vor.u32 %v1317_v11, %v4800_v28  ;;  %v1443_v47 = vor.u32 %v1442_v42, %v1438_v7  ;;  %v1500_v59 = vrot.slane %v4573_v38, 1  ;;  %v1501_v61 = vrot.slane %v4578_v6, 1  ;;  %v4863_v38 = vld [vmem:[%s5405_s4 + $0x1f8] sm:$0xff]  }
 0x1ed   : > { %v4804_v30 = vsel %vm4565_vm9, 0, %v1333_v21  ;;  %1844 = vmatprep.mubr.bf16.mxu1 %v4808_v32  ;;  %2175 = vmatmul.mubr.bf16.gmra.mrb[28].mxu0 %v4629_v37  ;;  %v1447_v0 = vrot.slane %v1445_v46, 1  ;;  %v4854_v3 = vsel %vm4565_vm9, %v4737_v51, 0  ;;  %v1454_v9 = vrot.slane %v1452_v31, 1 }
 0x1ee   : > { %2182 = vmatprep.mubr.bf16.mxu0 %v4779_v18  ;;  %3516 = vmatpush3.bf16.msra.mxu0 %v4787_v25  ;;  %v4857_v8 = vsel %vm608_vm1, %v1500_v59, %v1501_v61  ;;  %v4867_v6 = vsel %vm4565_vm9, 0, %v1319_v41  ;;  %v1323_v48 = vrot.slane %v1321_v58, 7  ;;  %v1450_v14 = vshrl.u32 %v4815_v44, 16 }
 0x1ef   : > { %3675 = vmatpush3.bf16.msra.mxu1 %v4008_v29  ;;  %3517 = vmatprep.subr.bf16.mxu0 %v4798_v27  ;;  %v4871_v51 = vsel %vm447_vm2, %v1443_v47, %v1447_v0  ;;  %v1457_v15 = vshll.u32 %v4854_v3, 16  ;;  %v1324_v29 = vshll.u32 %v4762_v45, 16  ;;  %v1464_v17 = vshll.u32 %v4867_v6, 16 }
 0x1f0   : > { %3676 = vmatprep.subr.bf16.mxu1 %v4013_v33  ;;  %v1455_v21 = vor.u32 %v1454_v9, %v1450_v14  ;;  %v1497_v22 = vrot.slane %v4595_v57, 1  ;;  %v1498_v53 = vrot.slane %v4591_v56, 1  ;;  %v1376_v42 = vsel %vm4565_vm9, %v4771_v12, 0  ;;  %v2876_v9 = vld [vmem:[%s5408_s7] sm:$0x3] }
 0x1f1   : > { %v2323_v11 = vshll.u32 %v4804_v30, 16  ;;  %v2328_v7 = vshll.u32 %v1376_v42, 16  ;;  %v1459_v46 = vrot.slane %v1457_v15, 1  ;;  %v2335_v41 = vrot.slane %v4804_v30, 1 }
 0x1f2   : > { %3518 = vmatpush3.bf16.msra.mxu0 %v4827_v52  ;;  %v4896_v45 = vsel %vm608_vm1, %v1497_v22, %v1498_v53  ;;  %v2336_v47 = vrot.slane %v1376_v42, 1  ;;  %v4902_v56 = vsel %vm4565_vm9, %v4800_v28, 0  ;;  %v2321_v57 = vshrl.u32 %v4804_v30, 16 }
 0x1f3   : > { %3677 = vmatpush3.bf16.msra.mxu1 %v4013_v33  ;;  %3519 = vmatprep.subr.bf16.mxu0 %v4833_v36  ;;  %v1326_v33 = vor.u32 %v1324_v29, %v1323_v48  ;;  %v2325_v12 = vrot.slane %v2323_v11, 1  ;;  %v4907_v31 = vsel %vm447_vm2, %v1455_v21, %v1459_v46  ;;  %v1466_v58 = vrot.slane %v1464_v17, 1 }
 0x1f4   : > { %1845 = vmatmul.mubr.bf16.gmra.mrb[12].mxu1 %v4710_v39  ;;  %3694 = vmatprep.subr.bf16.mxu1 %v4840_v54  ;;  %v4910_v59 = vsel %vm608_vm1, %v2335_v41, %v2336_v47  ;;  %v2330_v0 = vrot.slane %v2328_v7, 1  ;;  %v1462_v14 = vshrl.u32 %v4867_v6, 16  ;;  %v1469_v15 = vshll.u32 %v4902_v56, 16 }
 0x1f5   : > { %1852 = vmatprep.mubr.bf16.mxu1 %v4871_v51  ;;  %2183 = vmatmul.mubr.bf16.gmra.mrb[32].mxu0 %v4689_v19  ;;  %v4914_v61 = vsel %vm4565_vm9, 0, %v1326_v33  ;;  %v2326_v28 = vor.u32 %v2325_v12, %v2321_v57  ;;  %v4931_v53 = vsel %vm4565_vm9, %v1323_v48, 0  ;;  %v1503_v41 = vrot.slane %v4629_v37, 1 }
 0x1f6   : > { %2190 = vmatprep.mubr.bf16.mxu0 %v4808_v32  ;;  %3520 = vmatpush3.bf16.msra.mxu0 %v4849_v2  ;;  %v1467_v17 = vor.u32 %v1466_v58, %v1462_v14  ;;  %v1580_v21 = vshll.u32 %v4914_v61, 16  ;;  %v1471_v22 = vrot.slane %v1469_v15, 1  ;;  %v1578_v11 = vshrl.u32 %v4914_v61, 16  ;;  %v4019_v58 = vld [vmem:[%s5405_s4 + $0x88] sm:$0xff]  }
 0x1f7   : > { %3521 = vmatprep.subr.bf16.mxu0 %v4863_v38  ;;  %v4926_v29 = vsel %vm447_vm2, %v2326_v28, %v2330_v0  ;;  %v1585_v7 = vshll.u32 %v4931_v53, 16  ;;  %v1506_v47 = vrot.slane %v4689_v19, 1  ;;  %v1504_v57 = vrot.slane %v4644_v55, 1  ;;  %v4034_v28 = vld [vmem:[%s4194_s27 + $0x40] sm:$0x3] }
 0x1f8   : > { %v4935_v42 = vsel %vm447_vm2, %v1467_v17, %v1471_v22  ;;  %v1582_v33 = vrot.slane %v1580_v21, 1  ;;  %v1507_v12 = vrot.slane %v4718_v50, 1  ;;  %v2815_v0 = vrot.slane %v4034_v28, 1  ;;  %v4035_v17 = vld [vmem:[%s4194_s27 + $0x30] sm:$0xff]  ;;  %v4036_v21 = vld [vmem:[%s4194_s27 + $0x38] sm:$0xff]  ;;  %v4022_v28 = vld [vmem:[%s5405_s4 + $0xa0] sm:$0xff]  }
 0x1f9   : > { %v1587_v23 = vrot.slane %v1585_v7, 1  ;;  %v4962_v14 = vsel %vm608_vm1, %v1503_v41, %v1504_v57  ;;  %v2903_v15 = vsel %vm2901_vm11, %v2876_v9, 0  ;;  %v2812_v55 = vrot.slane %v4035_v17, 1  ;;  %v4020_v22 = vld [vmem:[%s5405_s4 + $0x90] sm:$0xff]  }
 0x1fa   : > { %3522 = vmatpush3.bf16.msra.mxu0 %v4883_v24  ;;  %v1583_v46 = vor.u32 %v1582_v33, %v1578_v11  ;;  %v2813_v50 = vrot.slane %v4036_v21, 1  ;;  %v1512_v33 = vrot.slane %v4706_v35, 1  ;;  %v1513_v7 = vrot.slane %v4792_v26, 1  ;;  %v4037_v41 = vld [vmem:[%s4194_s27 + $0x70] sm:$0x3] }
 0x1fb   : > { %3915 = vmatprep.subr.msk.bf16.mxu0 %vm2901_vm11, %v2876_v9  ;;  %v1509_v9 = vrot.slane %v4710_v39, 1  ;;  %v4040_v21 = vld [vmem:[%s4194_s27 + $0x88] sm:$0x3]  ;;  %v1593_v62 = vrot.slane %v4931_v53, 1  ;;  %v4050_v53 = vld [vmem:[%s4194_s27 + $0xc0] sm:$0xff] }
 0x1fc   : > { %1853 = vmatmul.mubr.bf16.gmra.mrb[16].mxu1 %v4706_v35  ;;  %v4944_v48 = vsel %vm447_vm2, %v1583_v46, %v1587_v23  ;;  %v2816_v11 = vsel %vm608_vm1, %v2813_v50, %v2815_v0  ;;  %v4993_v57 = vsel %vm608_vm1, %v1512_v33, %v1513_v7  ;;  %v1515_v0 = vrot.slane %v4815_v44, 1  ;;  %v4042_v7 = vld [vmem:[%s4194_s27 + $0x80] sm:$0xff] }
 0x1fd   : > { %1860 = vmatprep.mubr.bf16.mxu1 %v4907_v31  ;;  %2191 = vmatmul.mubr.bf16.gmra.mrb[36].mxu0 %v4710_v39 }
 0x1fe   : > { %2198 = vmatprep.mubr.bf16.mxu0 %v4871_v51 }
 0x204   : > { %1861 = vmatmul.mubr.bf16.gmra.mrb[20].mxu1 %v4815_v44 }
 0x205   : > { %1868 = vmatprep.mubr.bf16.mxu1 %v4935_v42  ;;  %2199 = vmatmul.mubr.bf16.gmra.mrb[40].mxu0 %v4706_v35 }
 0x206   : > { %2206 = vmatprep.mubr.bf16.mxu0 %v4907_v31 }
 0x20c   : > { %1869 = vmatmul.mubr.bf16.gmra.mrb[24].mxu1 %v4867_v6 }
 0x20d   : > { %1876 = vmatprep.mubr.bf16.mxu1 %v4944_v48  ;;  %2207 = vmatmul.mubr.bf16.gmra.mrb[44].mxu0 %v4815_v44 }
 0x20e   : > { %2214 = vmatprep.mubr.bf16.mxu0 %v4935_v42 }
 0x214   : > { %1877 = vmatmul.mubr.bf16.gmra.mrb[28].mxu1 %v4914_v61 }
 0x215   : > { %3678 = vmatprep.mubr.bf16.mxu1 %v4857_v8  ;;  %2215 = vmatmul.mubr.bf16.gmra.mrb[48].mxu0 %v4867_v6 }
 0x216   : > { %2563 = vmatprep.mubr.bf16.mxu0 %v4713_v40  ;;  %v4966_v40 = vsel %vm608_vm1, %v1506_v47, %v1507_v12  ;;  %v2825_v47 = vrot.slane %v4037_v41, 1  ;;  %v4038_v12 = vld [vmem:[%s4194_s27 + $0x60] sm:$0xff] }
 0x21c   : > { %3679 = vmatmul.mubr.bf16.vlgmr.msra.gmra.mrb[32].mxu1 %v4962_v14 }
 0x21d   : > { %3695 = vmatpush3.bf16.msra.mxu1 %v4840_v54  ;;  %3682 = vmatprep.mubr.bf16.mxu1 %v4966_v40  ;;  %v2814_v54 = vsel %vm608_vm1, %v2812_v55, %v2813_v50  ;;  %v2830_v50 = vrot.slane %v4040_v21, 1 }
 0x21e   : > { %2564 = vmatmul.mubr.bf16.vlgmr.msra.gmra.mrb[52].mxu0 %v4629_v37  ;;  %3696 = vmatprep.subr.bf16.mxu1 %v4019_v58  ;;  %v1510_v37 = vrot.slane %v4749_v60, 1  ;;  %v2868_v23 = vpack.c.bf16 %v2816_v11, %v2814_v54  ;;  %v2822_v60 = vrot.slane %v4038_v12, 1  ;;  %v4041_v11 = vld [vmem:[%s4194_s27 + $0x78] sm:$0xff] }
 0x21f   : > { %2571 = vmatprep.mubr.bf16.mxu0 %v4779_v18  ;;  %3759 = vmatpush3.bf16.msra.mxu0 %v2903_v15  ;;  %v4021_v18 = vld [vmem:[%s5405_s4 + $0x98] sm:$0xff]   ;;  %v1518_v15 = vrot.slane %v4867_v6, 1 }
 0x220   : > { %v4988_v46 = vsel %vm608_vm1, %v1509_v9, %v1510_v37  ;;  %v4023_v9 = vld [vmem:[%s5405_s4 + $0xa8] sm:$0xff]   ;;  %v2827_v37 = vrot.slane %v4041_v11, 1  ;;  %v4045_v12 = vld [vmem:[%s4194_s27 + $0x98] sm:$0xff]  ;;  %v4048_v11 = vld [vmem:[%s4194_s27 + $0xb0] sm:$0xff] }
 0x221   : > { %3697 = vmatpush3.bf16.msra.mxu1 %v4019_v58  ;;  %v4039_v58 = vld [vmem:[%s4194_s27 + $0x68] sm:$0xff] }
 0x222   : > { %3698 = vmatprep.subr.bf16.mxu1 %v4020_v22  ;;  %v2823_v26 = vrot.slane %v4039_v58, 1  ;;  %v4024_v58 = vld [vmem:[%s5405_s4 + $0xb0] sm:$0xff]  }
 0x224   : > { %3683 = vmatmul.mubr.bf16.gmra.mrb[36].mxu1 %v4988_v46  ;;  %v2824_v17 = vsel %vm608_vm1, %v2822_v60, %v2823_v26  ;;  %v2826_v55 = vsel %vm608_vm1, %v2823_v26, %v2825_v47  ;;  %v2833_v60 = vrot.slane %v4045_v12, 1  ;;  %v1592_v26 = vrot.slane %v4914_v61, 1 }
 0x225   : > { %3699 = vmatpush3.bf16.msra.mxu1 %v4020_v22  ;;  %3686 = vmatprep.mubr.bf16.mxu1 %v4993_v57  ;;  %v1519_v22 = vrot.slane %v4902_v56, 1  ;;  %v2870_v54 = vpack.c.bf16 %v2826_v55, %v2824_v17  ;;  %v4044_v56 = vld [vmem:[%s4194_s27 + $0x90] sm:$0xff]  ;;  %v4025_v55 = vld [vmem:[%s5405_s4 + $0xb8] sm:$0xff]  }
 0x226   : > { %2572 = vmatmul.mubr.bf16.gmra.mrb[56].mxu0 %v4689_v19  ;;  %3700 = vmatprep.subr.bf16.mxu1 %v4021_v18  ;;  %v1516_v19 = vrot.slane %v4854_v3, 1  ;;  %v4043_v3 = vld [vmem:[%s4194_s27 + $0xa0] sm:$0x3]  ;;  %v2832_v47 = vrot.slane %v4044_v56, 1  ;;  %v5045_v21 = vsel %vm608_vm1, %v1592_v26, %v1593_v62  ;;  %v4052_v26 = vld [vmem:[%s4194_s27 + $0xe8] sm:$0x3] }
 0x227   : > { %3760 = vmatprep.mubr.msk.bf16.mxu0 %vm659_vm3, %v2868_v23  ;;  %v2835_v23 = vrot.slane %v4043_v3, 1  ;;  %v5021_v41 = vsel %vm608_vm1, %v1518_v15, %v1519_v22  ;;  %v4047_v22 = vld [vmem:[%s4194_s27 + $0xa8] sm:$0xff] }
 0x228   : > { %v5014_v33 = vsel %vm608_vm1, %v1515_v0, %v1516_v19  ;;  %v2834_v15 = vsel %vm608_vm1, %v2832_v47, %v2833_v60  ;;  %v4051_v3 = vld [vmem:[%s4194_s27 + $0xc8] sm:$0xff] }
 0x229   : > { %3701 = vmatpush3.bf16.msra.mxu1 %v4021_v18  ;;  %v2828_v18 = vrot.slane %v4042_v7, 1  ;;  %v2836_v17 = vsel %vm608_vm1, %v2833_v60, %v2835_v23  ;;  %v2843_v23 = vrot.slane %v4051_v3, 1 }
 0x22a   : > { %3702 = vmatprep.subr.bf16.mxu1 %v4022_v28 }
 0x22b   : > { %v2831_v0 = vsel %vm608_vm1, %v2828_v18, %v2830_v50  ;;  %v2872_v50 = vpack.c.bf16 %v2836_v17, %v2834_v15  ;;  %v4054_v17 = vld [vmem:[%s4194_s27 + $0xe0] sm:$0xff] }
 0x22c   : > { %3687 = vmatmul.mubr.bf16.gmra.mrb[40].mxu1 %v5014_v33  ;;  %v2848_v62 = vrot.slane %v4054_v17, 1 }
 0x22d   : > { %3703 = vmatpush3.bf16.msra.mxu1 %v4022_v28  ;;  %3690 = vmatprep.mubr.bf16.mxu1 %v5021_v41  ;;  %v2829_v28 = vsel %vm608_vm1, %v2827_v37, %v2828_v18  ;;  %v4049_v37 = vld [vmem:[%s4194_s27 + $0xd0] sm:$0x3]  ;;  %v2842_v18 = vrot.slane %v4050_v53, 1 }
 0x22e   : > { %3704 = vmatprep.subr.bf16.mxu1 %v4023_v9  ;;  %3761 = vmatmul.mubr.msk.bf16.vlgmr.msra.gmra.mrb[60].mxu0 %vm659_vm3, %v2869_v5  ;;  %v2840_v5 = vrot.slane %v4046_v63, 1  ;;  %v2871_v19 = vpack.c.bf16 %v2831_v0, %v2829_v28  ;;  %v2845_v7 = vrot.slane %v4049_v37, 1  ;;  %v4053_v0 = vld [vmem:[%s4194_s27 + $0xd8] sm:$0xff] }
 0x22f   : > { %3764 = vmatprep.mubr.msk.bf16.mxu0 %vm659_vm3, %v2870_v54  ;;  %v2837_v54 = vrot.slane %v4047_v22, 1  ;;  %v2844_v12 = vsel %vm608_vm1, %v2842_v18, %v2843_v23  ;;  %v2847_v15 = vrot.slane %v4053_v0, 1 }
 0x230   : > { %v2846_v60 = vsel %vm608_vm1, %v2843_v23, %v2845_v7 }
 0x231   : > { %3705 = vmatpush3.bf16.msra.mxu1 %v4023_v9  ;;  %v2838_v9 = vrot.slane %v4048_v11, 1  ;;  %v2874_v28 = vpack.c.bf16 %v2846_v60, %v2844_v12 }
 0x232   : > { %3706 = vmatprep.subr.bf16.mxu1 %v4024_v58 }
 0x233   : > { %v2839_v56 = vsel %vm608_vm1, %v2837_v54, %v2838_v9  ;;  %v2841_v47 = vsel %vm608_vm1, %v2838_v9, %v2840_v5 }
 0x234   : > { %3691 = vmatmul.mubr.bf16.gmra.mrb[44].mxu1 %v5045_v21 }
 0x235   : > { %3707 = vmatpush3.bf16.msra.mxu1 %v4024_v58  ;;  %3710 = vmatprep.mubr.bf16.mxu1 %v4896_v45  ;;  %v2873_v58 = vpack.c.bf16 %v2841_v47, %v2839_v56  ;;  %v2850_v45 = vrot.slane %v4052_v26, 1 }
 0x236   : > { %3708 = vmatprep.subr.bf16.mxu1 %v4025_v55  ;;  %3765 = vmatmul.mubr.msk.bf16.gmra.mrb[64].mxu0 %vm659_vm3, %v2871_v19 }
 0x237   : > { %3768 = vmatprep.mubr.msk.bf16.mxu0 %vm659_vm3, %v2872_v50  ;;  %v2851_v63 = vsel %vm608_vm1, %v2848_v62, %v2850_v45 }
 0x239   : > { %3709 = vmatpush3.bf16.msra.mxu1 %v4025_v55 }
 0x23a   : > { %3776 = vmatprep.subr.bf16.mxu1 %v4535_v49  ;;  %v2849_v49 = vsel %vm608_vm1, %v2847_v15, %v2848_v62 }
 0x23b   : > { %v2875_v5 = vpack.c.bf16 %v2851_v63, %v2849_v49 }
 0x23c   : > { %3711 = vmatmul.mubr.bf16.vlgmr.msra.gmra.mrb[32].mxu1 %v4857_v8 }
 0x23d   : > { %3784 = vmatpush3.bf16.msra.mxu1 %v4650_v10  ;;  %3714 = vmatprep.mubr.bf16.mxu1 %v4962_v14  ;;  %v4026_v10 = vld [vmem:[%s5405_s4 + $0x200] sm:$0xff]  }
 0x23e   : > { %3777 = vmatprep.subr.bf16.mxu1 %v4658_v16  ;;  %3769 = vmatmul.mubr.msk.bf16.gmra.mrb[68].mxu0 %vm659_vm3, %v2873_v58  ;;  %v4027_v16 = vld [vmem:[%s5405_s4 + $0x208] sm:$0xff]  }
 0x23f   : > { %3772 = vmatprep.mubr.msk.bf16.mxu0 %vm659_vm3, %v2874_v28 }
 0x241   : > { %3785 = vmatpush3.bf16.msra.mxu1 %v4683_v20  ;;  %v4028_v20 = vld [vmem:[%s5405_s4 + $0x210] sm:$0xff]  }
 0x242   : > { %3778 = vmatprep.subr.bf16.mxu1 %v4702_v34  ;;  %v4029_v34 = vld [vmem:[%s5405_s4 + $0x218] sm:$0xff]  }
 0x244   : > { %3715 = vmatmul.mubr.bf16.gmra.mrb[36].mxu1 %v4966_v40 }
 0x245   : > { %3786 = vmatpush3.bf16.msra.mxu1 %v4724_v43  ;;  %3718 = vmatprep.mubr.bf16.mxu1 %v4988_v46  ;;  %v4031_v43 = vld [vmem:[%s5405_s4 + $0x228] sm:$0xff]  }
 0x246   : > { %3779 = vmatprep.subr.bf16.mxu1 %v4735_v1  ;;  %3773 = vmatmul.mubr.msk.bf16.gmra.mrb[72].mxu0 %vm659_vm3, %v2875_v5  ;;  %v4033_v1 = vld [vmem:[%s5405_s4 + $0x238] sm:$0xff]  }
 0x249   : > { %3787 = vmatpush3.bf16.msra.mxu1 %v4760_v4 }
 0x24a   : > { %3780 = vmatprep.subr.bf16.mxu1 %v4769_v13 }
 0x24c   : > { %3719 = vmatmul.mubr.bf16.gmra.mrb[40].mxu1 %v4993_v57 }
 0x24d   : > { %3788 = vmatpush3.bf16.msra.mxu1 %v4787_v25  ;;  %3722 = vmatprep.mubr.bf16.mxu1 %v5014_v33 }
 0x24e   : > { %3781 = vmatprep.subr.bf16.mxu1 %v4798_v27 }
 0x251   : > { %3789 = vmatpush3.bf16.msra.mxu1 %v4827_v52 }
 0x252   : > { %3782 = vmatprep.subr.bf16.mxu1 %v4833_v36 }
 0x254   : > { %3723 = vmatmul.mubr.bf16.gmra.mrb[44].mxu1 %v5021_v41 }
 0x255   : > { %3790 = vmatpush3.bf16.msra.mxu1 %v4849_v2  ;;  %2579 = vmatprep.mubr.bf16.mxu1 %v4808_v32 }
 0x256   : > { %3783 = vmatprep.subr.bf16.mxu1 %v4863_v38 }
 0x259   : > { %3791 = vmatpush3.bf16.msra.mxu1 %v4883_v24 }
 0x25a   : > { %3726 = vmatprep.subr.bf16.mxu1 %v4026_v10 }
 0x25c   : > { %2580 = vmatmul.mubr.bf16.vlgmr.msra.gmra.mrb[48].mxu1 %v4710_v39  ;;  %v4030_v39 = vld [vmem:[%s5405_s4 + $0x220] sm:$0xff]  }
 0x25d   : > { %3727 = vmatpush3.bf16.msra.mxu1 %v4026_v10  ;;  %2587 = vmatprep.mubr.bf16.mxu1 %v4871_v51 }
 0x25e   : > { %3728 = vmatprep.subr.bf16.mxu1 %v4027_v16 }
 0x261   : > { %3729 = vmatpush3.bf16.msra.mxu1 %v4027_v16 }
 0x262   : > { %3730 = vmatprep.subr.bf16.mxu1 %v4028_v20 }
 0x264   : > { %2588 = vmatmul.mubr.bf16.gmra.mrb[52].mxu1 %v4706_v35  ;;  %v4032_v35 = vld [vmem:[%s5405_s4 + $0x230] sm:$0xff]  }
 0x265   : > { %2595 = vmatprep.mubr.bf16.mxu1 %v4907_v31  ;;  %3731 = vmatpush3.bf16.msra.mxu1 %v4028_v20 }
 0x266   : > { %3732 = vmatprep.subr.bf16.mxu1 %v4029_v34 }
 0x269   : > { %3733 = vmatpush3.bf16.msra.mxu1 %v4029_v34 }
 0x26a   : > { %3734 = vmatprep.subr.bf16.mxu1 %v4030_v39 }
 0x26c   : > { %2596 = vmatmul.mubr.bf16.gmra.mrb[56].mxu1 %v4815_v44 }
 0x26d   : > { %2603 = vmatprep.mubr.bf16.mxu1 %v4935_v42  ;;  %3735 = vmatpush3.bf16.msra.mxu1 %v4030_v39 }
 0x26e   : > { %3736 = vmatprep.subr.bf16.mxu1 %v4031_v43 }
 0x271   : > { %3737 = vmatpush3.bf16.msra.mxu1 %v4031_v43 }
 0x272   : > { %3738 = vmatprep.subr.bf16.mxu1 %v4032_v35 }
 0x274   : > { %2604 = vmatmul.mubr.bf16.gmra.mrb[60].mxu1 %v4867_v6 }
 0x275   : > { %2611 = vmatprep.mubr.bf16.mxu1 %v4944_v48  ;;  %3739 = vmatpush3.bf16.msra.mxu1 %v4032_v35 }
 0x276   : > { %3740 = vmatprep.subr.bf16.mxu1 %v4033_v1 }
 0x279   : > { %3741 = vmatpush3.bf16.msra.mxu1 %v4033_v1 }
 0x27c   : > { %2612 = vmatmul.mubr.bf16.gmra.mrb[64].mxu1 %v4914_v61 }
 0x27d   : > { %2619 = vmatprep.mubr.bf16.mxu1 %v4926_v29 }
 0x284   : > { %2620 = vmatmul.mubr.bf16.gmra.mrb[68].mxu1 %v4804_v30 }
 0x285   : > { %3742 = vmatprep.mubr.bf16.mxu1 %v4962_v14 }
 0x28c   : > { %3743 = vmatmul.mubr.bf16.vlgmr.msra.gmra.mrb[32].mxu1 %v4966_v40 }
 0x28d   : > { %3746 = vmatprep.mubr.bf16.mxu1 %v4988_v46 }
 0x294   : > { %3747 = vmatmul.mubr.bf16.gmra.mrb[36].mxu1 %v4993_v57 }
 0x295   : > { %3750 = vmatprep.mubr.bf16.mxu1 %v5014_v33 }
 0x29c   : > { %3751 = vmatmul.mubr.bf16.gmra.mrb[40].mxu1 %v5021_v41 }
 0x29d   : > { %3754 = vmatprep.mubr.bf16.mxu1 %v5045_v21 }
 0x2a4   : > { %3755 = vmatmul.mubr.bf16.gmra.mrb[44].mxu1 %v4910_v59 }
 0x2a9   : > { %v3363_v4 = vpop.f32.mrb[0].mxu1 }
 0x2aa   : > { %v3364_v13 = vpop.f32.mrb[1].mxu1 }
 0x2ab   : > { %v3365_v25 = vadd.f32 %v3364_v13, %v3363_v4  ;;  %v3366_v27 = vpop.f32.mrb[2].mxu1 }
 0x2ac   : > { %v3367_v30 = vpop.f32.mrb[3].mxu1 }
 0x2ad   : > { %v3368_v32 = vadd.f32 %v3367_v30, %v3366_v27 }
 0x2b0   : > { %v3443_v44 = vpop.f32.mrb[20].mxu0 }
 0x2b1   : > { %v3444_v52 = vpop.f32.mrb[21].mxu0 }
 0x2b2   : > { %v3445_v36 = vadd.f32 %v3444_v52, %v3443_v44  ;;  %v3446_v2 = vpop.f32.mrb[22].mxu0 }
 0x2b3   : > { %v3447_v8 = vpop.f32.mrb[23].mxu0 }
 0x2b4   : > { %v5135_v38 = vadd.f32 %v3445_v36, %v3365_v25  ;;  %v3448_v6 = vadd.f32 %v3447_v8, %v3446_v2 }
 0x2b6   : > { %v5137_v51 = vadd.f32 %v3448_v6, %v3368_v32 }
 0x2b7   : > { %v3369_v24 = vpop.f32.mrb[4].mxu1 }
 0x2b8   : > { %v3370_v31 = vpop.f32.mrb[5].mxu1  ;;  %v3449_v61 = vpop.f32.mrb[24].mxu0 }
 0x2b9   : > { %v3371_v59 = vadd.f32 %v3370_v31, %v3369_v24  ;;  %v3372_v29 = vpop.f32.mrb[6].mxu1  ;;  %v3450_v42 = vpop.f32.mrb[25].mxu0 }
 0x2ba   : > { %v3451_v48 = vadd.f32 %v3450_v42, %v3449_v61  ;;  %v3373_v14 = vpop.f32.mrb[7].mxu1  ;;  %v3452_v40 = vpop.f32.mrb[26].mxu0 }
 0x2bb   : > { %v3374_v46 = vadd.f32 %v3373_v14, %v3372_v29  ;;  %v3453_v57 = vpop.f32.mrb[27].mxu0 }
 0x2bc   : > { %v5139_v33 = vadd.f32 %v3451_v48, %v3371_v59  ;;  %v3454_v41 = vadd.f32 %v3453_v57, %v3452_v40 }
 0x2be   : > { %v5141_v55 = vadd.f32 %v3454_v41, %v3374_v46 }
 0x2bf   : > { %v3375_v19 = vpop.f32.mrb[8].mxu1 }
 0x2c0   : > { %v3376_v21 = vpop.f32.mrb[9].mxu1  ;;  %v3455_v50 = vpop.f32.mrb[28].mxu0 }
 0x2c1   : > { %v3377_v22 = vadd.f32 %v3376_v21, %v3375_v19  ;;  %v3378_v54 = vpop.f32.mrb[10].mxu1  ;;  %v3456_v11 = vpop.f32.mrb[29].mxu0 }
 0x2c2   : > { %v3457_v9 = vadd.f32 %v3456_v11, %v3455_v50  ;;  %v3379_v37 = vpop.f32.mrb[11].mxu1  ;;  %v3458_v7 = vpop.f32.mrb[30].mxu0 }
 0x2c3   : > { %v3380_v53 = vadd.f32 %v3379_v37, %v3378_v54  ;;  %v3459_v18 = vpop.f32.mrb[31].mxu0 }
 0x2c4   : > { %v5143_v3 = vadd.f32 %v3457_v9, %v3377_v22  ;;  %v3460_v23 = vadd.f32 %v3459_v18, %v3458_v7 }
 0x2c6   : > { %v5145_v56 = vadd.f32 %v3460_v23, %v3380_v53 }
 0x2c7   : > { %v3381_v47 = vpop.f32.mrb[12].mxu1 }
 0x2c8   : > { %v3382_v12 = vpop.f32.mrb[13].mxu1  ;;  %v3461_v60 = vpop.f32.mrb[32].mxu0 }
 0x2c9   : > { %v3383_v58 = vadd.f32 %v3382_v12, %v3381_v47  ;;  %v3384_v26 = vpop.f32.mrb[14].mxu1  ;;  %v3462_v45 = vpop.f32.mrb[33].mxu0 }
 0x2ca   : > { %v3463_v28 = vadd.f32 %v3462_v45, %v3461_v60  ;;  %v3385_v0 = vpop.f32.mrb[15].mxu1  ;;  %v3464_v15 = vpop.f32.mrb[34].mxu0 }
 0x2cb   : > { %v3386_v17 = vadd.f32 %v3385_v0, %v3384_v26  ;;  %v3465_v62 = vpop.f32.mrb[35].mxu0 }
 0x2cc   : > { %v5147_v49 = vadd.f32 %v3463_v28, %v3383_v58  ;;  %v3466_v63 = vadd.f32 %v3465_v62, %v3464_v15 }
 0x2ce   : > { %v5149_v5 = vadd.f32 %v3466_v63, %v3386_v17 }
 0x2cf   : > { %v3387_v10 = vpop.f32.mrb[16].mxu1 }
 0x2d0   : > { %v3388_v16 = vpop.f32.mrb[17].mxu1  ;;  %v3467_v20 = vpop.f32.mrb[36].mxu0 }
 0x2d1   : > { %v3389_v34 = vadd.f32 %v3388_v16, %v3387_v10  ;;  %v3390_v39 = vpop.f32.mrb[18].mxu1  ;;  %v3468_v43 = vpop.f32.mrb[37].mxu0 }
 0x2d2   : > { %v3469_v35 = vadd.f32 %v3468_v43, %v3467_v20  ;;  %v3391_v1 = vpop.f32.mrb[19].mxu1  ;;  %v3470_v4 = vpop.f32.mrb[38].mxu0 }
 0x2d3   : > { %v3392_v13 = vadd.f32 %v3391_v1, %v3390_v39  ;;  %v3471_v25 = vpop.f32.mrb[39].mxu0 }
 0x2d4   : > { %v5151_v27 = vadd.f32 %v3469_v35, %v3389_v34  ;;  %v3472_v30 = vadd.f32 %v3471_v25, %v3470_v4 }
 0x2d6   : > { %v5153_v32 = vadd.f32 %v3472_v30, %v3392_v13 }
 0x2d7   : > { %v3393_v44 = vpop.f32.mrb[20].mxu1 }
 0x2d8   : > { %v3394_v52 = vpop.f32.mrb[21].mxu1  ;;  %v3473_v36 = vpop.f32.mrb[40].mxu0 }
 0x2d9   : > { %v3395_v2 = vadd.f32 %v3394_v52, %v3393_v44  ;;  %v3396_v8 = vpop.f32.mrb[22].mxu1  ;;  %v3474_v6 = vpop.f32.mrb[41].mxu0 }
 0x2da   : > { %v3475_v24 = vadd.f32 %v3474_v6, %v3473_v36  ;;  %v3397_v31 = vpop.f32.mrb[23].mxu1  ;;  %v3476_v61 = vpop.f32.mrb[42].mxu0 }
 0x2db   : > { %v3398_v59 = vadd.f32 %v3397_v31, %v3396_v8  ;;  %v3477_v29 = vpop.f32.mrb[43].mxu0 }
 0x2dc   : > { %v5155_v42 = vadd.f32 %v3475_v24, %v3395_v2  ;;  %v3478_v48 = vadd.f32 %v3477_v29, %v3476_v61 }
 0x2de   : > { %v5157_v14 = vadd.f32 %v3478_v48, %v3398_v59 }
 0x2df   : > { %v3399_v40 = vpop.f32.mrb[24].mxu1 }
 0x2e0   : > { %v3400_v46 = vpop.f32.mrb[25].mxu1  ;;  %v3479_v57 = vpop.f32.mrb[44].mxu0 }
 0x2e1   : > { %v3401_v41 = vadd.f32 %v3400_v46, %v3399_v40  ;;  %v3402_v19 = vpop.f32.mrb[26].mxu1  ;;  %v3480_v21 = vpop.f32.mrb[45].mxu0 }
 0x2e2   : > { %v3481_v50 = vadd.f32 %v3480_v21, %v3479_v57  ;;  %v3403_v22 = vpop.f32.mrb[27].mxu1  ;;  %v3482_v54 = vpop.f32.mrb[46].mxu0 }
 0x2e3   : > { %v3404_v11 = vadd.f32 %v3403_v22, %v3402_v19  ;;  %v3483_v9 = vpop.f32.mrb[47].mxu0 }
 0x2e4   : > { %v5159_v37 = vadd.f32 %v3481_v50, %v3401_v41  ;;  %v3484_v7 = vadd.f32 %v3483_v9, %v3482_v54 }
 0x2e6   : > { %v5161_v53 = vadd.f32 %v3484_v7, %v3404_v11 }
 0x2e7   : > { %v3405_v18 = vpop.f32.mrb[28].mxu1 }
 0x2e8   : > { %v3406_v23 = vpop.f32.mrb[29].mxu1  ;;  %v3485_v47 = vpop.f32.mrb[48].mxu0 }
 0x2e9   : > { %v3407_v12 = vadd.f32 %v3406_v23, %v3405_v18  ;;  %v3408_v60 = vpop.f32.mrb[30].mxu1  ;;  %v3486_v58 = vpop.f32.mrb[49].mxu0 }
 0x2ea   : > { %v3487_v26 = vadd.f32 %v3486_v58, %v3485_v47  ;;  %v3409_v45 = vpop.f32.mrb[31].mxu1  ;;  %v3488_v28 = vpop.f32.mrb[50].mxu0 }
 0x2eb   : > { %v3410_v0 = vadd.f32 %v3409_v45, %v3408_v60  ;;  %v3489_v15 = vpop.f32.mrb[51].mxu0 }
 0x2ec   : > { %v5163_v17 = vadd.f32 %v3487_v26, %v3407_v12  ;;  %v3490_v62 = vadd.f32 %v3489_v15, %v3488_v28 }
 0x2ee   : > { %v5165_v63 = vadd.f32 %v3490_v62, %v3410_v0 }
 0x2f1   : > { %v3523_v10 = vpop.f32.mrb[52].mxu0 }
 0x2f2   : > { %v3524_v16 = vpop.f32.mrb[53].mxu0 }
 0x2f3   : > { %v3525_v20 = vadd.f32 %v3524_v16, %v3523_v10  ;;  %v3526_v34 = vpop.f32.mrb[54].mxu0 }
 0x2f4   : > { %v3527_v39 = vpop.f32.mrb[55].mxu0 }
 0x2f5   : > { %v3528_v43 = vadd.f32 %v3527_v39, %v3526_v34  ;;  %v5168_v35 = vadd.f32 %v5135_v38, %v3525_v20 }
 0x2f7   : > { %v5171_v1 = vadd.f32 %v5137_v51, %v3528_v43 }
 0x2f9   : > { %v3529_v4 = vpop.f32.mrb[56].mxu0 }
 0x2fa   : > { %v3530_v13 = vpop.f32.mrb[57].mxu0 }
 0x2fb   : > { %v3531_v25 = vadd.f32 %v3530_v13, %v3529_v4  ;;  %v3532_v30 = vpop.f32.mrb[58].mxu0 }
 0x2fc   : > { %v3533_v44 = vpop.f32.mrb[59].mxu0 }
 0x2fd   : > { %v3534_v52 = vadd.f32 %v3533_v44, %v3532_v30  ;;  %v5174_v36 = vadd.f32 %v5139_v33, %v3531_v25 }
 0x2ff   : > { %v5177_v2 = vadd.f32 %v5141_v55, %v3534_v52 }
 0x301   : > { %v5179_v8 = vpop.f32.mrb[60].mxu0 }
 0x302   : > { %v5181_v6 = vpop.f32.mrb[61].mxu0 }
 0x303   : > { %v5183_v38 = vpop.f32.mrb[62].mxu0 }
 0x304   : > { %v5185_v51 = vpop.f32.mrb[63].mxu0 }
 0x309   : > { %v5187_v24 = vpop.f32.mrb[64].mxu0 }
 0x30a   : > { %v5189_v31 = vpop.f32.mrb[65].mxu0 }
 0x30b   : > { %v5191_v61 = vpop.f32.mrb[66].mxu0 }
 0x30c   : > { %v5193_v59 = vpop.f32.mrb[67].mxu0 }
 0x311   : > { %v5195_v33 = vpop.f32.mrb[68].mxu0 }
 0x312   : > { %v5197_v55 = vpop.f32.mrb[69].mxu0 }
 0x313   : > { %v5199_v29 = vpop.f32.mrb[70].mxu0 }
 0x314   : > { %v5201_v48 = vpop.f32.mrb[71].mxu0 }
 0x319   : > { %v5203_v40 = vpop.f32.mrb[72].mxu0 }
 0x31a   : > { %v5205_v46 = vpop.f32.mrb[73].mxu0 }
 0x31b   : > { %v5207_v57 = vpop.f32.mrb[74].mxu0 }
 0x31c   : > { %v5209_v41 = vpop.f32.mrb[75].mxu0 }
 0x32f   : > { %v3535_v19 = vpop.f32.mrb[48].mxu1 }
 0x330   : > { %v3536_v21 = vpop.f32.mrb[49].mxu1 }
 0x331   : > { %v3537_v50 = vadd.f32 %v3536_v21, %v3535_v19  ;;  %v3538_v22 = vpop.f32.mrb[50].mxu1 }
 0x332   : > { %v3539_v54 = vpop.f32.mrb[51].mxu1 }
 0x333   : > { %v3540_v11 = vadd.f32 %v3539_v54, %v3538_v22  ;;  %v5212_v9 = vadd.f32 %v5143_v3, %v3537_v50 }
 0x335   : > { %v5215_v7 = vadd.f32 %v5145_v56, %v3540_v11 }
 0x337   : > { %v3541_v18 = vpop.f32.mrb[52].mxu1 }
 0x338   : > { %v3542_v23 = vpop.f32.mrb[53].mxu1 }
 0x339   : > { %v3543_v47 = vadd.f32 %v3542_v23, %v3541_v18  ;;  %v3544_v12 = vpop.f32.mrb[54].mxu1  ;;  %v5245_v18 = vld [vmem:[%s5409_s8] ss:$0 sm:$0xff] }
 0x33a   : > { %v3545_v60 = vpop.f32.mrb[55].mxu1 }
 0x33b   : > { %v3546_v58 = vadd.f32 %v3545_v60, %v3544_v12  ;;  %v5218_v26 = vadd.f32 %v5147_v49, %v3543_v47  ;;  %v5259_v47 = vld [vmem:[%s5410_s9] ss:$0 sm:$0xff] }
 0x33c   : > { %v5264_v60 = vld [vmem:[%s5406_s5] ss:$0 sm:$0xff] }
 0x33d   : > { %v5221_v45 = vadd.f32 %v5149_v5, %v3546_v58 }
 0x33f   : > { %v3547_v28 = vpop.f32.mrb[56].mxu1 }
 0x340   : > { %v3548_v0 = vpop.f32.mrb[57].mxu1 }
 0x341   : > { %v3549_v15 = vadd.f32 %v3548_v0, %v3547_v28  ;;  %v3550_v3 = vpop.f32.mrb[58].mxu1 }
 0x342   : > { %v3551_v62 = vpop.f32.mrb[59].mxu1 }
 0x343   : > { %v3552_v10 = vadd.f32 %v3551_v62, %v3550_v3  ;;  %v5224_v56 = vadd.f32 %v5151_v27, %v3549_v15  ;;  %v3012_v62 = vmul.f32 %v5183_v38, %v5245_v18  ;;  %v3015_v38 = vmul.f32 %v5187_v24, %v5245_v18 }
 0x345   : > { %v5227_v16 = vadd.f32 %v5153_v32, %v3552_v10 }
 0x347   : > { %v3553_v20 = vpop.f32.mrb[60].mxu1 }
 0x348   : > { %v3554_v34 = vpop.f32.mrb[61].mxu1 }
 0x349   : > { %v3555_v49 = vadd.f32 %v3554_v34, %v3553_v20  ;;  %v3556_v39 = vpop.f32.mrb[62].mxu1  ;;  %v3010_v34 = vmul.f32 %v5245_v18, %v5185_v51 }
 0x34a   : > { %v3557_v43 = vpop.f32.mrb[63].mxu1 }
 0x34b   : > { %v3558_v5 = vadd.f32 %v3557_v43, %v3556_v39  ;;  %v5230_v4 = vadd.f32 %v5155_v42, %v3555_v49  ;;  %v3033_v24 = vadd.f32 %v5259_v47, %v3010_v34 }
 0x34d   : > { %v5233_v13 = vadd.f32 %v5157_v14, %v3558_v5 }
 0x34f   : > { %v3559_v25 = vpop.f32.mrb[64].mxu1 }
 0x350   : > { %v3560_v30 = vpop.f32.mrb[65].mxu1 }
 0x351   : > { %v3561_v27 = vadd.f32 %v3560_v30, %v3559_v25  ;;  %v3562_v44 = vpop.f32.mrb[66].mxu1  ;;  %v3035_v25 = vadd.f32 %v5259_v47, %v3012_v62  ;;  %v3019_v62 = vmul.f32 %v5195_v33, %v5245_v18 }
 0x352   : > { %v3563_v52 = vpop.f32.mrb[67].mxu1 }
 0x353   : > { %v3564_v32 = vadd.f32 %v3563_v52, %v3562_v44  ;;  %v5236_v19 = vadd.f32 %v5159_v37, %v3561_v27 }
 0x355   : > { %v5239_v21 = vadd.f32 %v5161_v53, %v3564_v32  ;;  %v3011_v53 = vmul.f32 %v5179_v8, %v5245_v18  ;;  %v5272_v8 = vld [vmem:[%s5407_s6] ss:$0 sm:$0xff] }
 0x357   : > { %v3565_v50 = vpop.f32.mrb[68].mxu1  ;;  %v3034_v15 = vadd.f32 %v5259_v47, %v3011_v53 }
 0x358   : > { %v3566_v42 = vpop.f32.mrb[69].mxu1 }
 0x359   : > { %v3567_v22 = vadd.f32 %v3566_v42, %v3565_v50  ;;  %v3568_v54 = vpop.f32.mrb[70].mxu1  ;;  %v3038_v50 = vadd.f32 %v5259_v47, %v3015_v38  ;;  %v3042_v38 = vadd.f32 %v5259_v47, %v3019_v62 }
 0x35a   : > { %v3569_v14 = vpop.f32.mrb[71].mxu1 }
 0x35b   : > { %v3570_v11 = vadd.f32 %v3569_v14, %v3568_v54  ;;  %v5248_v23 = vadd.f32 %v5163_v17, %v3567_v22  ;;  %v3009_v17 = vmul.f32 %v5245_v18, %v5181_v6 }
 0x35d   : > { %v5251_v37 = vadd.f32 %v5165_v63, %v3570_v11  ;;  %v3032_v10 = vadd.f32 %v5259_v47, %v3009_v17  ;;  %v3016_v11 = vmul.f32 %v5191_v61, %v5245_v18 }
 0x35f   : > { %v3744_v12 = vpop.f32.mrb[32].mxu1 }
 0x360   : > { %v3794_v63 = vadd.f32 %v5174_v36, %v3744_v12  ;;  %v2662_v58 = vpop.f32.mrb[33].mxu1 }
 0x361   : > { %v3797_v28 = vadd.f32 %v5168_v35, %v2662_v58  ;;  %v3745_v0 = vpop.f32.mrb[34].mxu1 }
 0x362   : > { %v2750_v3 = vmul.f32 %v3794_v63, %v5264_v60  ;;  %v3800_v6 = vadd.f32 %v5177_v2, %v3745_v0  ;;  %v2665_v36 = vpop.f32.mrb[35].mxu1 }
 0x363   : > { %v2748_v20 = vmul.f32 %v3797_v28, %v5264_v60  ;;  %v3803_v35 = vadd.f32 %v5171_v1, %v2665_v36  ;;  %v3013_v1 = vmul.f32 %v5245_v18, %v5189_v31 }
 0x364   : > { %v2773_v49 = vadd.f32 %v5272_v8, %v2750_v3  ;;  %v2751_v39 = vmul.f32 %v3800_v6, %v5264_v60 }
 0x365   : > { %v2771_v2 = vadd.f32 %v5272_v8, %v2748_v20  ;;  %v2749_v43 = vmul.f32 %v3803_v35, %v5264_v60  ;;  %v3036_v63 = vadd.f32 %v5259_v47, %v3013_v1 }
 0x366   : > { %v3050_v5 = vadd.f32 %v3034_v15, %v2773_v49  ;;  %v2774_v30 = vadd.f32 %v5272_v8, %v2751_v39 }
 0x367   : > { %v3048_v51 = vadd.f32 %v3032_v10, %v2771_v2  ;;  %v2772_v27 = vadd.f32 %v5272_v8, %v2749_v43  ;;  %v3748_v44 = vpop.f32.mrb[36].mxu1  ;;  %v3039_v10 = vadd.f32 %v5259_v47, %v3016_v11 }
 0x368   : > { %v3066_v52 = vmax.f32 %v3050_v5, 0.0  ;;  %v3051_v32 = vadd.f32 %v3035_v25, %v2774_v30  ;;  %v3806_v42 = vadd.f32 %v5218_v26, %v3748_v44  ;;  %v2678_v31 = vpop.f32.mrb[37].mxu1 }
 0x369   : > { %v3064_v22 = vmax.f32 %v3048_v51, 0.0  ;;  %v3049_v54 = vadd.f32 %v3033_v24, %v2772_v27  ;;  %v3809_v14 = vadd.f32 %v5212_v9, %v2678_v31  ;;  %v3749_v53 = vpop.f32.mrb[38].mxu1  ;;  %v3014_v9 = vmul.f32 %v5245_v18, %v5193_v59 }
 0x36a   : > { %3082 = vst [vmem:[%s5298_s29 + $0x10] sm:$0xff] %v3066_v52  ;;  %v3067_v12 = vmax.f32 %v3051_v32, 0.0  ;;  %v2754_v17 = vmul.f32 %v3806_v42, %v5264_v60  ;;  %v3812_v58 = vadd.f32 %v5221_v45, %v3749_v53  ;;  %v2681_v26 = vpop.f32.mrb[39].mxu1  ;;  %v3023_v31 = vmul.f32 %v5203_v40, %v5245_v18 }
 0x36b   : > { %3080 = vst [vmem:[%s5298_s29] sm:$0xff] %v3064_v22  ;;  %v3065_v28 = vmax.f32 %v3049_v54, 0.0  ;;  %v2752_v0 = vmul.f32 %v3809_v14, %v5264_v60  ;;  %v3815_v61 = vadd.f32 %v5215_v7, %v2681_v26  ;;  %v3017_v7 = vmul.f32 %v5245_v18, %v5197_v55 }
 0x36c   : > { %3083 = vst [vmem:[%s5298_s29 + $0x18] sm:$0xff] %v3067_v12  ;;  %v2777_v15 = vadd.f32 %v5272_v8, %v2754_v17  ;;  %v2755_v3 = vmul.f32 %v3812_v58, %v5264_v60  ;;  %v3037_v34 = vadd.f32 %v5259_v47, %v3014_v9  ;;  %v3020_v55 = vmul.f32 %v5199_v29, %v5245_v18 }
 0x36d   : > { %3081 = vst [vmem:[%s5298_s29 + $0x8] sm:$0xff] %v3065_v28  ;;  %v2775_v45 = vadd.f32 %v5272_v8, %v2752_v0  ;;  %v2753_v6 = vmul.f32 %v3815_v61, %v5264_v60  ;;  %v3040_v27 = vadd.f32 %v5259_v47, %v3017_v7  ;;  %v3046_v58 = vadd.f32 %v5259_v47, %v3023_v31 }
 0x36e   : > { %v3054_v36 = vadd.f32 %v3038_v50, %v2777_v15  ;;  %v2778_v59 = vadd.f32 %v5272_v8, %v2755_v3  ;;  %v3043_v14 = vadd.f32 %v5259_v47, %v3020_v55 }
 0x36f   : > { %v3052_v20 = vadd.f32 %v3036_v63, %v2775_v45  ;;  %v2776_v35 = vadd.f32 %v5272_v8, %v2753_v6  ;;  %v3752_v33 = vpop.f32.mrb[40].mxu1 }
 0x370   : > { %v3070_v49 = vmax.f32 %v3054_v36, 0.0  ;;  %v3055_v39 = vadd.f32 %v3039_v10, %v2778_v59  ;;  %v3818_v2 = vadd.f32 %v5230_v4, %v3752_v33  ;;  %v2694_v43 = vpop.f32.mrb[41].mxu1 }
 0x371   : > { %v3068_v5 = vmax.f32 %v3052_v20, 0.0  ;;  %v3053_v25 = vadd.f32 %v3037_v34, %v2776_v35  ;;  %v3821_v30 = vadd.f32 %v5224_v56, %v2694_v43  ;;  %v3753_v1 = vpop.f32.mrb[42].mxu1  ;;  %v3018_v56 = vmul.f32 %v5245_v18, %v5201_v48 }
 0x372   : > { %3086 = vst [vmem:[%s5298_s29 + $0x30] sm:$0xff] %v3070_v49  ;;  %v3071_v51 = vmax.f32 %v3055_v39, 0.0  ;;  %v2758_v24 = vmul.f32 %v3818_v2, %v5264_v60  ;;  %v3824_v44 = vadd.f32 %v5233_v13, %v3753_v1  ;;  %v2697_v4 = vpop.f32.mrb[43].mxu1 }
 0x373   : > { %3084 = vst [vmem:[%s5298_s29 + $0x20] sm:$0xff] %v3068_v5  ;;  %v3069_v52 = vmax.f32 %v3053_v25, 0.0  ;;  %v2756_v32 = vmul.f32 %v3821_v30, %v5264_v60  ;;  %v3827_v29 = vadd.f32 %v5227_v16, %v2697_v4  ;;  %v3021_v16 = vmul.f32 %v5245_v18, %v5205_v46 }
 0x374   : > { %3087 = vst [vmem:[%s5298_s29 + $0x38] sm:$0xff] %v3071_v51  ;;  %v2781_v50 = vadd.f32 %v5272_v8, %v2758_v24  ;;  %v2759_v42 = vmul.f32 %v3824_v44, %v5264_v60  ;;  %v3041_v53 = vadd.f32 %v5259_v47, %v3018_v56  ;;  %v3024_v46 = vmul.f32 %v5207_v57, %v5245_v18 }
 0x375   : > { %3085 = vst [vmem:[%s5298_s29 + $0x28] sm:$0xff] %v3069_v52  ;;  %v2779_v13 = vadd.f32 %v5272_v8, %v2756_v32  ;;  %v2757_v22 = vmul.f32 %v3827_v29, %v5264_v60  ;;  %v3044_v45 = vadd.f32 %v5259_v47, %v3021_v16 }
 0x376   : > { %v3058_v54 = vadd.f32 %v3042_v38, %v2781_v50  ;;  %v2782_v48 = vadd.f32 %v5272_v8, %v2759_v42  ;;  %v3047_v35 = vadd.f32 %v5259_v47, %v3024_v46 }
 0x377   : > { %v3056_v11 = vadd.f32 %v3040_v27, %v2779_v13  ;;  %v2780_v12 = vadd.f32 %v5272_v8, %v2757_v22  ;;  %v3756_v40 = vpop.f32.mrb[44].mxu1 }
 0x378   : > { %v3074_v17 = vmax.f32 %v3058_v54, 0.0  ;;  %v3059_v63 = vadd.f32 %v3043_v14, %v2782_v48  ;;  %v3830_v26 = vadd.f32 %v5248_v23, %v3756_v40  ;;  %v2710_v28 = vpop.f32.mrb[45].mxu1 }
 0x379   : > { %v3072_v0 = vmax.f32 %v3056_v11, 0.0  ;;  %v3057_v9 = vadd.f32 %v3041_v53, %v2780_v12  ;;  %v3833_v61 = vadd.f32 %v5236_v19, %v2710_v28  ;;  %v3757_v15 = vpop.f32.mrb[46].mxu1  ;;  %v3022_v19 = vmul.f32 %v5245_v18, %v5209_v41 }
 0x37a   : > { %3090 = vst [vmem:[%s5298_s29 + $0x50] sm:$0xff] %v3074_v17  ;;  %v3075_v3 = vmax.f32 %v3059_v63, 0.0  ;;  %v2762_v62 = vmul.f32 %v3830_v26, %v5264_v60  ;;  %v3836_v6 = vadd.f32 %v5251_v37, %v3757_v15  ;;  %v2713_v23 = vpop.f32.mrb[47].mxu1 }
 0x37b   : > { %3088 = vst [vmem:[%s5298_s29 + $0x40] sm:$0xff] %v3072_v0  ;;  %v3073_v36 = vmax.f32 %v3057_v9, 0.0  ;;  %v2760_v10 = vmul.f32 %v3833_v61, %v5264_v60  ;;  %v3839_v57 = vadd.f32 %v5239_v21, %v2713_v23  ;;  %v3045_v18 = vadd.f32 %v5259_v47, %v3022_v19 }
 0x37c   : > { %3091 = vst [vmem:[%s5298_s29 + $0x58] sm:$0xff] %v3075_v3  ;;  %v2785_v59 = vadd.f32 %v5272_v8, %v2762_v62  ;;  %v2763_v7 = vmul.f32 %v3836_v6, %v5264_v60 }
 0x37d   : > { %3089 = vst [vmem:[%s5298_s29 + $0x48] sm:$0xff] %v3073_v36  ;;  %v2783_v37 = vadd.f32 %v5272_v8, %v2760_v10  ;;  %v2761_v20 = vmul.f32 %v3839_v57, %v5264_v60 }
 0x37e   : > { %v3062_v34 = vadd.f32 %v3046_v58, %v2785_v59  ;;  %v2786_v41 = vadd.f32 %v5272_v8, %v2763_v7 }
 0x37f   : > { %v3060_v21 = vadd.f32 %v3044_v45, %v2783_v37  ;;  %v2784_v33 = vadd.f32 %v5272_v8, %v2761_v20 }
 0x380   : > { %v3078_v49 = vmax.f32 %v3062_v34, 0.0  ;;  %v3063_v39 = vadd.f32 %v3047_v35, %v2786_v41 }
 0x381   : > { %v3076_v38 = vmax.f32 %v3060_v21, 0.0  ;;  %v3061_v2 = vadd.f32 %v3045_v18, %v2784_v33 }
 0x382   : > { %3094 = vst [vmem:[%s5298_s29 + $0x70] sm:$0xff] %v3078_v49  ;;  %v3079_v43 = vmax.f32 %v3063_v39, 0.0 }
 0x383   : > { %3092 = vst [vmem:[%s5298_s29 + $0x60] sm:$0xff] %v3076_v38  ;;  %v3077_v5 = vmax.f32 %v3061_v2, 0.0 }
 0x384   : > { %3095 = vst [vmem:[%s5298_s29 + $0x78] sm:$0xff] %v3079_v43 }
 0x385   : > { %3093 = vst [vmem:[%s5298_s29 + $0x68] sm:$0xff] %v3077_v5 }
 0x386 PF: > { %s20_s17 = sadd.s32 1, %s4093_s17   ;;  %s5416_s13 = smov %s4085_s15 }
 0x387   : > { %p17_p9 = scmp.ge.s32.totalorder %s20_s17, 6   ;;  %s5417_s14 = smov %s4089_s16 }
 0x388   : > { %s5418_s15 = smov %s5421_s18  ;;  %s5419_s16 = smov %s5425_s19 }
 0x389   :  { %19 = sbr.rel (!%p17_p9) target bundleno = 3 (0x3), region = 91 }

</bundles_post_ra>
